<compile_context>
chip_gen: v7x
topology: tpu7x:2x2x1
jax: 0.10.0
libtpu: 0.0.40
codegen_flags: <defaults>
</compile_context>

<pallas_src>
import math
from functools import partial

import jax
import jax.numpy as jnp
from jax import lax
from jax.experimental import pallas as pl
from jax.experimental.pallas import tpu as pltpu

RMS_EPS = 1e-6
UNIT_EPS = 1e-12


def _round_up(x: int, m: int) -> int:
    return ((x + m - 1) // m) * m


def _vmem_limit_bytes(*tile_bytes: int) -> int:
    # Inputs/outputs are double-buffered by the Pallas pipeline.  Leave headroom
    # and cap below v7x's 64 MiB physical VMEM (v5e/v6e have 128 MiB).
    need = 2 * sum(int(b) for b in tile_bytes) + (8 << 20)
    return int(min(max(need, 32 << 20), 48 << 20))


def _unit_norm(w):
    """unit_norm over the fan-in axis (standard magnitude-preserving def)."""
    return w * lax.rsqrt(jnp.sum(w * w, axis=-1, keepdims=True) + UNIT_EPS)


# ----------------------------------------------------------------------------
# Kernel 1: magnitude-preserving linear   y = rms_norm?(x) @ W_normed.T
#   - unit_norm(W) is hoisted to the wrapper (done once, not per grid step).
#   - matmul operands in `matmul_dtype` (bf16 by default), f32 accumulation.
#   - elementwise rms_norm stays in f32 (v5e has no bf16 VPU path).
# ----------------------------------------------------------------------------
def _mp_linear_kernel(x_ref, w_ref, o_ref, *, norm_input: bool, matmul_dtype):
    x = x_ref[...]                                        # (tm, Din) f32
    if norm_input:                                        # fused rms_norm (out_proj)
        x = x * lax.rsqrt(jnp.mean(x * x, axis=-1, keepdims=True) + RMS_EPS)
    # x @ w.T without an explicit transpose (contract fan-in axes) on the MXU.
    y = lax.dot_general(x.astype(matmul_dtype), w_ref[...],
                        (((1,), (1,)), ((), ())),
                        preferred_element_type=jnp.float32)
    o_ref[...] = y.astype(o_ref.dtype)


def mp_linear(x2d, w_normed, *, norm_input: bool,
              matmul_dtype=jnp.bfloat16, tm: int = 256, tn: int = 512):
    """y = rms_norm?(x2d) @ w_normed.T, tiled over (M, Dout).

    w_normed must already be unit-normalized (hoisted out of the kernel).
    Din (the fan-in / K axis) is kept whole per tile because the fused
    rms_norm needs the complete row.
    # TODO(synk): for very large Din, add a K-tiled accumulator variant with a
    # separate (non-fused) rms_norm pass.
    """
    M, Din = x2d.shape
    Dout = w_normed.shape[0]
    w = w_normed.astype(matmul_dtype)                     # halves weight DMA bytes

    tm = min(tm, _round_up(M, 8))
    tn = min(tn, _round_up(Dout, 128))
    m_pad = _round_up(M, tm)
    n_pad = _round_up(Dout, tn)
    if m_pad != M:
        x2d = jnp.pad(x2d, ((0, m_pad - M), (0, 0)))
    if n_pad != Dout:
        w = jnp.pad(w, ((0, n_pad - Dout), (0, 0)))

    x_bytes = tm * Din * x2d.dtype.itemsize
    w_bytes = tn * Din * w.dtype.itemsize
    o_bytes = tm * tn * x2d.dtype.itemsize

    out = pl.pallas_call(
        partial(_mp_linear_kernel, norm_input=norm_input, matmul_dtype=matmul_dtype),
        out_shape=jax.ShapeDtypeStruct((m_pad, n_pad), x2d.dtype),
        grid_spec=pltpu.PrefetchScalarGridSpec(
            num_scalar_prefetch=0,
            grid=(m_pad // tm, n_pad // tn),
            in_specs=[
                pl.BlockSpec((tm, Din), lambda i, j: (i, 0)),
                pl.BlockSpec((tn, Din), lambda i, j: (j, 0)),
            ],
            out_specs=pl.BlockSpec((tm, tn), lambda i, j: (i, j)),
        ),
        compiler_params=pltpu.CompilerParams(
            dimension_semantics=("parallel", "parallel"),
            vmem_limit_bytes=_vmem_limit_bytes(x_bytes, w_bytes, o_bytes)),
    )(x2d, w)
    return out[:M, :Dout]


# ----------------------------------------------------------------------------
# Kernel 2: flash-style causal attention with fused rms_norm + qk_gain.
#   grid = (B, num_q_tiles, num_kv_tiles); all heads handled per invocation.
#   Inputs/outputs stay in merged-head (B, S, H*Dh) layout (lane-dense output,
#   no wrapper transposes).  Online-softmax state lives in VMEM scratch.
# ----------------------------------------------------------------------------
def _flash_attn_kernel(q_ref, k_ref, v_ref, g_ref, o_ref,
                       m_sc, l_sc, acc_sc,
                       *, num_heads, head_dim, tq, tkv, matmul_dtype):
    qi = pl.program_id(1)
    kvi = pl.program_id(2)
    H, Dh = num_heads, head_dim
    q_start = qi * tq
    kv_start = kvi * tkv

    @pl.when(kvi == 0)
    def _init():
        m_sc[...] = jnp.full_like(m_sc, -jnp.inf)
        l_sc[...] = jnp.zeros_like(l_sc)
        acc_sc[...] = jnp.zeros_like(acc_sc)

    # Causal block skip: this kv tile is entirely in the future of the q tile.
    @pl.when(kv_start <= q_start + (tq - 1))
    def _compute():
        # Global-index causal mask, shared across heads.
        rows = q_start + lax.broadcasted_iota(jnp.int32, (tq, tkv), 0)
        cols = kv_start + lax.broadcasted_iota(jnp.int32, (tq, tkv), 1)
        causal = cols <= rows
        scale = 1.0 / math.sqrt(Dh)

        q_all = q_ref[0]                                  # (tq,  H*Dh) f32
        k_all = k_ref[0]                                  # (tkv, H*Dh) f32
        v_all = v_ref[0]                                  # (tkv, H*Dh) f32
        g_all = g_ref[...]                                # (1,   H*Dh) f32

        # Per-head slices of the merged tile (static lane slices).
        # TODO(synk): a head-batched formulation would fill more VPU lanes when
        # Dh < 128; kept per-head 2-D for robust lowering.
        for h in range(H):
            sl = slice(h * Dh, (h + 1) * Dh)
            qh, kh, vh, gh = q_all[:, sl], k_all[:, sl], v_all[:, sl], g_all[:, sl]

            # rms_norm over head dim + qk_gain (all f32 on VPU/EUP — v5e safe).
            qh = qh * lax.rsqrt(jnp.mean(qh * qh, axis=-1, keepdims=True) + RMS_EPS) * gh
            kh = kh * lax.rsqrt(jnp.mean(kh * kh, axis=-1, keepdims=True) + RMS_EPS) * gh

            # Scores on the MXU: bf16 operands, f32 accumulation.
            s = lax.dot_general(qh.astype(matmul_dtype), kh.astype(matmul_dtype),
                                (((1,), (1,)), ((), ())),
                                preferred_element_type=jnp.float32) * scale
            s = jnp.where(causal, s, -jnp.inf)

            # Online (flash) softmax update.
            m_prev = m_sc[h]                              # (tq, 1)
            m_new = jnp.maximum(m_prev, jnp.max(s, axis=-1, keepdims=True))
            alpha = jnp.exp(m_prev - m_new)
            p = jnp.exp(s - m_new)                        # (tq, tkv) f32
            l_sc[h] = alpha * l_sc[h] + jnp.sum(p, axis=-1, keepdims=True)
            acc_sc[h] = alpha * acc_sc[h] + jnp.dot(
                p.astype(matmul_dtype), vh.astype(matmul_dtype),
                preferred_element_type=jnp.float32)
            m_sc[h] = m_new

    @pl.when(kvi == pl.num_programs(2) - 1)
    def _finalize():
        for h in range(H):
            inv_l = pl.reciprocal(l_sc[h], approx=True)   # (tq, 1)
            o_ref[0, :, h * Dh:(h + 1) * Dh] = (acc_sc[h] * inv_l).astype(o_ref.dtype)


def flash_causal_attention(q, k, v, gain2d, *, num_heads,
                           matmul_dtype=jnp.bfloat16, tq: int = 128):
    """q, k, v: (B, S, D) in merged-head layout; gain2d: (1, D). Returns (B, S, D)."""
    B, S, D = q.shape
    Dh = D // num_heads

    t = min(tq, _round_up(S, 8))                          # q tile == kv tile
    s_pad = _round_up(S, t)
    if s_pad != S:
        pad = ((0, 0), (0, s_pad - S), (0, 0))
        q, k, v = jnp.pad(q, pad), jnp.pad(k, pad), jnp.pad(v, pad)
    n_tiles = s_pad // t

    q_spec = pl.BlockSpec((1, t, D), lambda b, qi, kvi: (b, qi, 0))
    # Clamp the kv block index for fully-masked (skipped) steps so Pallas does
    # not re-DMA tiles whose compute is skipped by pl.when.
    kv_spec = pl.BlockSpec((1, t, D), lambda b, qi, kvi: (b, jnp.minimum(kvi, qi), 0))
    g_spec = pl.BlockSpec((1, D), lambda b, qi, kvi: (0, 0))
    o_spec = pl.BlockSpec((1, t, D), lambda b, qi, kvi: (b, qi, 0))

    tile_b = t * D * 4
    scratch_b = num_heads * t * (Dh + 2) * 4
    out = pl.pallas_call(
        partial(_flash_attn_kernel, num_heads=num_heads, head_dim=Dh,
                tq=t, tkv=t, matmul_dtype=matmul_dtype),
        out_shape=jax.ShapeDtypeStruct((B, s_pad, D), q.dtype),
        grid_spec=pltpu.PrefetchScalarGridSpec(
            num_scalar_prefetch=0,
            grid=(B, n_tiles, n_tiles),
            in_specs=[q_spec, kv_spec, kv_spec, g_spec],
            out_specs=o_spec,
            scratch_shapes=[
                pltpu.VMEM((num_heads, t, 1), jnp.float32),    # m
                pltpu.VMEM((num_heads, t, 1), jnp.float32),    # l
                pltpu.VMEM((num_heads, t, Dh), jnp.float32),   # acc
            ]),
        compiler_params=pltpu.CompilerParams(
            dimension_semantics=("parallel", "parallel", "arbitrary"),
            vmem_limit_bytes=_vmem_limit_bytes(4 * tile_b + D * 4 + scratch_b)),
    )(q, k, v, gain2d)
    return out[:, :S, :] if s_pad != S else out


# ----------------------------------------------------------------------------
# Full MPSelfAttention forward (glue in plain JAX, compute in Pallas)
# ----------------------------------------------------------------------------
def mp_self_attention(x, w_in, w_out, qk_gain, num_heads,
                      matmul_dtype=jnp.bfloat16):
    # TODO(synk): rp_freqs / apply_rope path not implemented (rp_freqs=None).
    B, S, D = x.shape
    assert D % num_heads == 0

    # unit_norm(W) hoisted: computed once in f32, then cast for the MXU.
    w_in_n = _unit_norm(w_in)
    w_out_n = _unit_norm(w_out)

    x2d = x.reshape(B * S, D)
    qkv = mp_linear(x2d, w_in_n, norm_input=False,
                    matmul_dtype=matmul_dtype)            # (B*S, 3D)
    qkv = qkv.reshape(B, S, 3 * D)
    # Contiguous column-chunk slices (no 5-D permute / head transpose in HBM).
    q, k, v = qkv[:, :, 0:D], qkv[:, :, D:2 * D], qkv[:, :, 2 * D:3 * D]

    gain2d = qk_gain.reshape(1, D)                        # h-major, Dh-minor
    a = flash_causal_attention(q, k, v, gain2d, num_heads=num_heads,
                               matmul_dtype=matmul_dtype)  # (B, S, D) merged-head

    # rms_norm + out_proj fused in the mp_linear kernel; no transpose needed.
    out = mp_linear(a.reshape(B * S, D), w_out_n, norm_input=True,
                    matmul_dtype=matmul_dtype)
    return out.reshape(B, S, D)


# ----------------------------------------------------------------------------
# Pure-JAX reference (mirrors the PyTorch forward; matmul operand casts are
# mirrored so the kernel can be checked tightly in both f32 and bf16 modes).
# ----------------------------------------------------------------------------
def reference(x, w_in, w_out, qk_gain, num_heads, matmul_dtype=jnp.float32):
    def rmsn(t):
        return t * lax.rsqrt(jnp.mean(t * t, axis=-1, keepdims=True) + RMS_EPS)

    def mm(a2d, b2d):  # a @ b.T with operand cast, f32 accumulation
        return lax.dot_general(a2d.astype(matmul_dtype), b2d.astype(matmul_dtype),
                               (((1,), (1,)), ((), ())),
                               preferred_element_type=jnp.float32)

    B, S, D = x.shape
    H = num_heads
    Dh = D // H
    qkv = mm(x.reshape(B * S, D), _unit_norm(w_in))
    qkv = qkv.reshape(B, S, 3, H, Dh).transpose(2, 0, 3, 1, 4)
    q, k, v = qkv[0], qkv[1], qkv[2]
    g = qk_gain.reshape(1, H, 1, Dh)
    q = rmsn(q) * g
    k = rmsn(k) * g
    s = jnp.einsum("bhqd,bhkd->bhqk", q.astype(matmul_dtype), k.astype(matmul_dtype),
                   preferred_element_type=jnp.float32) / math.sqrt(Dh)
    mask = jnp.tril(jnp.ones((S, S), dtype=bool))
    s = jnp.where(mask[None, None], s, -jnp.inf)
    p = jax.nn.softmax(s, axis=-1)
    a = jnp.einsum("bhqk,bhkd->bhqd", p.astype(matmul_dtype), v.astype(matmul_dtype),
                   preferred_element_type=jnp.float32)
    a = a.transpose(0, 2, 1, 3).reshape(B, S, D)
    a = rmsn(a)
    return mm(a.reshape(B * S, D), _unit_norm(w_out)).reshape(B, S, D)


if __name__ == "__main__":
    B, S, D, H = 2, 8, 32, 4

    key = jax.random.PRNGKey(0)
    kx, kwi, kwo, kg = jax.random.split(key, 4)

    x = jax.random.normal(kx, (B, S, D), dtype=jnp.float32)
    # Module init: weight rows are unit-normalized randn.
    w_in = _unit_norm(jax.random.normal(kwi, (3 * D, D), dtype=jnp.float32))
    w_out = _unit_norm(jax.random.normal(kwo, (D, D), dtype=jnp.float32))
    # SParameter(ones(D)) is exactly ones at init; perturb slightly so the
    # qk_gain path is actually exercised by the check.
    qk_gain = 1.0 + 0.05 * jax.random.normal(kg, (D,), dtype=jnp.float32)

    # Check both the exact-precision (f32) mode and the performance (bf16
    # matmul operands, f32 accumulation) mode against matching references.
    for mmdt in (jnp.float32, jnp.bfloat16):
        fwd = jax.jit(partial(mp_self_attention, num_heads=H, matmul_dtype=mmdt))
        out = jax.block_until_ready(fwd(x, w_in, w_out, qk_gain))
        ref = reference(x, w_in, w_out, qk_gain, num_heads=H, matmul_dtype=mmdt)
        assert out.shape == (B, S, D)
        err = float(jnp.max(jnp.abs(out - ref)))
        assert err < 2e-2, (str(mmdt), err)

    print("KERNEL_OK")
</pallas_src>

<mosaic_0001>
module attributes {stable_mosaic.version = 11 : i64} {
  func.func @_mp_linear_kernel(%arg0: i32, %arg1: i32, %arg2: memref<16x32xf32, #tpu.memory_space<vmem>>, %arg3: memref<128x32xf32, #tpu.memory_space<vmem>>, %arg4: memref<16x128xf32, #tpu.memory_space<vmem>>) attributes {dimension_semantics = [#tpu.dimension_semantics<parallel>, #tpu.dimension_semantics<parallel>], iteration_bounds = array<i64: 1, 1>, scalar_prefetch = 0 : i64, scratch_operands = 0 : i64, tpu.core_type = #tpu.core_type<tc>, window_params = [{transform_indices = @transform_0, window_bounds = array<i64: 16, 32>}, {transform_indices = @transform_1, window_bounds = array<i64: 128, 32>}, {transform_indices = @transform_2, window_bounds = array<i64: 16, 128>}]} {
    %c0 = arith.constant 0 : index
    %c0_0 = arith.constant 0 : index
    %0 = vector.load %arg2[%c0, %c0_0] : memref<16x32xf32, #tpu.memory_space<vmem>>, vector<16x32xf32>
    %c0_1 = arith.constant 0 : index
    %c0_2 = arith.constant 0 : index
    %1 = vector.load %arg3[%c0_1, %c0_2] : memref<128x32xf32, #tpu.memory_space<vmem>>, vector<128x32xf32>
    %cst = arith.constant dense<0.000000e+00> : vector<16x128xf32>
    %2 = tpu.matmul %0, %1, %cst {dimension_numbers = #tpu.dot_dimension_numbers<[1], [1], [0], [0], [0, 0, 1, 0], [], []>} : vector<16x32xf32>, vector<128x32xf32>, vector<16x128xf32> -> vector<16x128xf32>
    %c0_3 = arith.constant 0 : index
    %c0_4 = arith.constant 0 : index
    %3 = vector.load %arg4[%c0_3, %c0_4] : memref<16x128xf32, #tpu.memory_space<vmem>>, vector<16x128xf32>
    tpu.vector_store %arg4[%c0_3, %c0_4], %2 {strides = array<i32>} : memref<16x128xf32, #tpu.memory_space<vmem>>, vector<16x128xf32>,
    return
  }
  func.func @transform_0(%arg0: i32, %arg1: i32) -> (i32, i32) {
    %c0_i32 = arith.constant 0 : i32
    %c0_i32_0 = arith.constant 0 : i32
    return %arg0, %c0_i32 : i32, i32
  }
  func.func @transform_1(%arg0: i32, %arg1: i32) -> (i32, i32) {
    %c0_i32 = arith.constant 0 : i32
    %c0_i32_0 = arith.constant 0 : i32
    return %arg1, %c0_i32 : i32, i32
  }
  func.func @transform_2(%arg0: i32, %arg1: i32) -> (i32, i32) {
    %c0_i32 = arith.constant 0 : i32
    return %arg0, %arg1 : i32, i32
  }
}

module attributes {stable_mosaic.version = 11 : i64} {
  func.func @_mp_linear_kernel(%arg0: i32, %arg1: i32, %arg2: memref<16x32xf32, #tpu.memory_space<vmem>>, %arg3: memref<128x32xf32, #tpu.memory_space<vmem>>, %arg4: memref<16x128xf32, #tpu.memory_space<vmem>>) attributes {dimension_semantics = [#tpu.dimension_semantics<parallel>, #tpu.dimension_semantics<parallel>], iteration_bounds = array<i64: 1, 1>, scalar_prefetch = 0 : i64, scratch_operands = 0 : i64, tpu.core_type = #tpu.core_type<tc>, window_params = [{transform_indices = @transform_0, window_bounds = array<i64: 16, 32>}, {transform_indices = @transform_1, window_bounds = array<i64: 128, 32>}, {transform_indices = @transform_2, window_bounds = array<i64: 16, 128>}]} {
    %c0 = arith.constant 0 : index
    %c0_0 = arith.constant 0 : index
    %0 = vector.load %arg2[%c0, %c0_0] : memref<16x32xf32, #tpu.memory_space<vmem>>, vector<16x32xf32>
    %1 = arith.mulf %0, %0 : vector<16x32xf32>
    %cst = arith.constant dense<0.000000e+00> : vector<16xf32>
    %2 = vector.multi_reduction <add>, %1, %cst [1] : vector<16x32xf32> to vector<16xf32>
    %3 = vector.shape_cast %2 : vector<16xf32> to vector<16x1xf32>
    %cst_1 = arith.constant 3.200000e+01 : f32
    %4 = vector.broadcast %cst_1 : f32 to vector<16x1xf32>
    %5 = arith.divf %3, %4 : vector<16x1xf32>
    %cst_2 = arith.constant 9.99999997E-7 : f32
    %6 = vector.broadcast %cst_2 : f32 to vector<16x1xf32>
    %7 = arith.addf %5, %6 : vector<16x1xf32>
    %8 = math.rsqrt %7 : vector<16x1xf32>
    %9 = vector.broadcast %8 : vector<16x1xf32> to vector<16x32xf32>
    %10 = arith.mulf %0, %9 : vector<16x32xf32>
    %c0_3 = arith.constant 0 : index
    %c0_4 = arith.constant 0 : index
    %11 = vector.load %arg3[%c0_3, %c0_4] : memref<128x32xf32, #tpu.memory_space<vmem>>, vector<128x32xf32>
    %cst_5 = arith.constant dense<0.000000e+00> : vector<16x128xf32>
    %12 = tpu.matmul %10, %11, %cst_5 {dimension_numbers = #tpu.dot_dimension_numbers<[1], [1], [0], [0], [0, 0, 1, 0], [], []>} : vector<16x32xf32>, vector<128x32xf32>, vector<16x128xf32> -> vector<16x128xf32>
    %c0_6 = arith.constant 0 : index
    %c0_7 = arith.constant 0 : index
    %13 = vector.load %arg4[%c0_6, %c0_7] : memref<16x128xf32, #tpu.memory_space<vmem>>, vector<16x128xf32>
    tpu.vector_store %arg4[%c0_6, %c0_7], %12 {strides = array<i32>} : memref<16x128xf32, #tpu.memory_space<vmem>>, vector<16x128xf32>,
    return
  }
  func.func @transform_0(%arg0: i32, %arg1: i32) -> (i32, i32) {
    %c0_i32 = arith.constant 0 : i32
    %c0_i32_0 = arith.constant 0 : i32
    return %arg0, %c0_i32 : i32, i32
  }
  func.func @transform_1(%arg0: i32, %arg1: i32) -> (i32, i32) {
    %c0_i32 = arith.constant 0 : i32
    %c0_i32_0 = arith.constant 0 : i32
    return %arg1, %c0_i32 : i32, i32
  }
  func.func @transform_2(%arg0: i32, %arg1: i32) -> (i32, i32) {
    %c0_i32 = arith.constant 0 : i32
    return %arg0, %arg1 : i32, i32
  }
}

module attributes {stable_mosaic.version = 11 : i64} {
  func.func @_flash_attn_kernel(%arg0: i32, %arg1: i32, %arg2: i32, %arg3: memref<1x8x32xf32, #tpu.memory_space<vmem>>, %arg4: memref<1x8x32xf32, #tpu.memory_space<vmem>>, %arg5: memref<1x8x32xf32, #tpu.memory_space<vmem>>, %arg6: memref<1x32xf32, #tpu.memory_space<vmem>>, %arg7: memref<1x8x32xf32, #tpu.memory_space<vmem>>, %arg8: memref<4x8x1xf32, #tpu.memory_space<vmem>>, %arg9: memref<4x8x1xf32, #tpu.memory_space<vmem>>, %arg10: memref<4x8x8xf32, #tpu.memory_space<vmem>>) attributes {dimension_semantics = [#tpu.dimension_semantics<parallel>, #tpu.dimension_semantics<parallel>, #tpu.dimension_semantics<arbitrary>], iteration_bounds = array<i64: 2, 1, 1>, scalar_prefetch = 0 : i64, scratch_operands = 3 : i64, tpu.core_type = #tpu.core_type<tc>, window_params = [{transform_indices = @transform_0, window_bounds = array<i64: 1, 8, 32>}, {transform_indices = @transform_1, window_bounds = array<i64: 1, 8, 32>}, {transform_indices = @transform_2, window_bounds = array<i64: 1, 8, 32>}, {pipeline_mode = #tpu.pipeline_mode<synchronous>, transform_indices = @transform_3, window_bounds = array<i64: 1, 32>}, {transform_indices = @transform_4, window_bounds = array<i64: 1, 8, 32>}]} {
    %c8_i32 = arith.constant 8 : i32
    %0 = arith.muli %arg1, %c8_i32 : i32
    %c8_i32_0 = arith.constant 8 : i32
    %1 = arith.muli %arg2, %c8_i32_0 : i32
    %c0_i32 = arith.constant 0 : i32
    %2 = arith.cmpi eq, %arg2, %c0_i32 : i32
    %3 = arith.extui %2 : i1 to i32
    %c0_i32_1 = arith.constant 0 : i32
    %4 = arith.cmpi ne, %3, %c0_i32_1 : i32
    scf.if %4 {
      %cst = arith.constant 0xFF800000 : f32
      %12 = vector.broadcast %cst : f32 to vector<4x8x1xf32>
      %c0 = arith.constant 0 : index
      %c0_5 = arith.constant 0 : index
      %c0_6 = arith.constant 0 : index
      %13 = vector.load %arg8[%c0, %c0_5, %c0_6] : memref<4x8x1xf32, #tpu.memory_space<vmem>>, vector<4x8x1xf32>
      tpu.vector_store %arg8[%c0, %c0_5, %c0_6], %12 {strides = array<i32>} : memref<4x8x1xf32, #tpu.memory_space<vmem>>, vector<4x8x1xf32>,
      %cst_7 = arith.constant 0.000000e+00 : f32
      %14 = vector.broadcast %cst_7 : f32 to vector<4x8x1xf32>
      %c0_8 = arith.constant 0 : index
      %c0_9 = arith.constant 0 : index
      %c0_10 = arith.constant 0 : index
      %15 = vector.load %arg9[%c0_8, %c0_9, %c0_10] : memref<4x8x1xf32, #tpu.memory_space<vmem>>, vector<4x8x1xf32>
      tpu.vector_store %arg9[%c0_8, %c0_9, %c0_10], %14 {strides = array<i32>} : memref<4x8x1xf32, #tpu.memory_space<vmem>>, vector<4x8x1xf32>,
      %cst_11 = arith.constant 0.000000e+00 : f32
      %16 = vector.broadcast %cst_11 : f32 to vector<4x8x8xf32>
      %c0_12 = arith.constant 0 : index
      %c0_13 = arith.constant 0 : index
      %c0_14 = arith.constant 0 : index
      %17 = vector.load %arg10[%c0_12, %c0_13, %c0_14] : memref<4x8x8xf32, #tpu.memory_space<vmem>>, vector<4x8x8xf32>
      tpu.vector_store %arg10[%c0_12, %c0_13, %c0_14], %16 {strides = array<i32>} : memref<4x8x8xf32, #tpu.memory_space<vmem>>, vector<4x8x8xf32>,
    } else {
    }
    %c7_i32 = arith.constant 7 : i32
    %5 = arith.addi %0, %c7_i32 : i32
    %6 = arith.cmpi sle, %1, %5 : i32
    %7 = arith.extui %6 : i1 to i32
    %c0_i32_2 = arith.constant 0 : i32
    %8 = arith.cmpi ne, %7, %c0_i32_2 : i32
    scf.if %8 {
      %12 = tpu.iota {dimensions = array<i32: 0>} : vector<8x8xi32>
      %13 = vector.broadcast %0 : i32 to vector<8x8xi32>
      %14 = arith.addi %13, %12 : vector<8x8xi32>
      %15 = tpu.iota {dimensions = array<i32: 1>} : vector<8x8xi32>
      %16 = vector.broadcast %1 : i32 to vector<8x8xi32>
      %17 = arith.addi %16, %15 : vector<8x8xi32>
      %18 = arith.cmpi sle, %17, %14 : vector<8x8xi32>
      %c0 = arith.constant 0 : index
      %c0_5 = arith.constant 0 : index
      %c0_6 = arith.constant 0 : index
      %19 = vector.load %arg3[%c0, %c0_5, %c0_6] : memref<1x8x32xf32, #tpu.memory_space<vmem>>, vector<1x8x32xf32>
      %20 = vector.shape_cast %19 : vector<1x8x32xf32> to vector<8x32xf32>
      %c0_7 = arith.constant 0 : index
      %c0_8 = arith.constant 0 : index
      %c0_9 = arith.constant 0 : index
      %21 = vector.load %arg4[%c0_7, %c0_8, %c0_9] : memref<1x8x32xf32, #tpu.memory_space<vmem>>, vector<1x8x32xf32>
      %22 = vector.shape_cast %21 : vector<1x8x32xf32> to vector<8x32xf32>
      %c0_10 = arith.constant 0 : index
      %c0_11 = arith.constant 0 : index
      %c0_12 = arith.constant 0 : index
      %23 = vector.load %arg5[%c0_10, %c0_11, %c0_12] : memref<1x8x32xf32, #tpu.memory_space<vmem>>, vector<1x8x32xf32>
      %24 = vector.shape_cast %23 : vector<1x8x32xf32> to vector<8x32xf32>
      %c0_13 = arith.constant 0 : index
      %c0_14 = arith.constant 0 : index
      %25 = vector.load %arg6[%c0_13, %c0_14] : memref<1x32xf32, #tpu.memory_space<vmem>>, vector<1x32xf32>
      %26 = vector.extract_strided_slice %20 {offsets = [0, 0], sizes = [8, 8], strides = [1, 1]} : vector<8x32xf32> to vector<8x8xf32>
      %27 = vector.extract_strided_slice %22 {offsets = [0, 0], sizes = [8, 8], strides = [1, 1]} : vector<8x32xf32> to vector<8x8xf32>
      %28 = vector.extract_strided_slice %24 {offsets = [0, 0], sizes = [8, 8], strides = [1, 1]} : vector<8x32xf32> to vector<8x8xf32>
      %29 = vector.extract_strided_slice %25 {offsets = [0, 0], sizes = [1, 8], strides = [1, 1]} : vector<1x32xf32> to vector<1x8xf32>
      %30 = arith.mulf %26, %26 : vector<8x8xf32>
      %cst = arith.constant dense<0.000000e+00> : vector<8xf32>
      %31 = vector.multi_reduction <add>, %30, %cst [1] : vector<8x8xf32> to vector<8xf32>
      %32 = vector.shape_cast %31 : vector<8xf32> to vector<8x1xf32>
      %cst_15 = arith.constant 8.000000e+00 : f32
      %33 = vector.broadcast %cst_15 : f32 to vector<8x1xf32>
      %34 = arith.divf %32, %33 : vector<8x1xf32>
      %cst_16 = arith.constant 9.99999997E-7 : f32
      %35 = vector.broadcast %cst_16 : f32 to vector<8x1xf32>
      %36 = arith.addf %34, %35 : vector<8x1xf32>
      %37 = math.rsqrt %36 : vector<8x1xf32>
      %38 = vector.broadcast %37 : vector<8x1xf32> to vector<8x8xf32>
      %39 = arith.mulf %26, %38 : vector<8x8xf32>
      %40 = vector.broadcast %29 : vector<1x8xf32> to vector<8x8xf32>
      %41 = arith.mulf %39, %40 : vector<8x8xf32>
      %42 = arith.mulf %27, %27 : vector<8x8xf32>
      %cst_17 = arith.constant dense<0.000000e+00> : vector<8xf32>
      %43 = vector.multi_reduction <add>, %42, %cst_17 [1] : vector<8x8xf32> to vector<8xf32>
      %44 = vector.shape_cast %43 : vector<8xf32> to vector<8x1xf32>
      %cst_18 = arith.constant 8.000000e+00 : f32
      %45 = vector.broadcast %cst_18 : f32 to vector<8x1xf32>
      %46 = arith.divf %44, %45 : vector<8x1xf32>
      %cst_19 = arith.constant 9.99999997E-7 : f32
      %47 = vector.broadcast %cst_19 : f32 to vector<8x1xf32>
      %48 = arith.addf %46, %47 : vector<8x1xf32>
      %49 = math.rsqrt %48 : vector<8x1xf32>
      %50 = vector.broadcast %49 : vector<8x1xf32> to vector<8x8xf32>
      %51 = arith.mulf %27, %50 : vector<8x8xf32>
      %52 = vector.broadcast %29 : vector<1x8xf32> to vector<8x8xf32>
      %53 = arith.mulf %51, %52 : vector<8x8xf32>
      %cst_20 = arith.constant dense<0.000000e+00> : vector<8x8xf32>
      %54 = tpu.matmul %41, %53, %cst_20 {dimension_numbers = #tpu.dot_dimension_numbers<[1], [1], [0], [0], [0, 0, 1, 0], [], []>} : vector<8x8xf32>, vector<8x8xf32>, vector<8x8xf32> -> vector<8x8xf32>
      %cst_21 = arith.constant 0.353553385 : f32
      %55 = vector.broadcast %cst_21 : f32 to vector<8x8xf32>
      %56 = arith.mulf %54, %55 : vector<8x8xf32>
      %cst_22 = arith.constant 0xFF800000 : f32
      %57 = vector.broadcast %cst_22 : f32 to vector<8x8xf32>
      %58 = arith.select %18, %56, %57 : vector<8x8xi1>, vector<8x8xf32>
      %c0_23 = arith.constant 0 : index
      %c0_24 = arith.constant 0 : index
      %c0_25 = arith.constant 0 : index
      %59 = vector.load %arg8[%c0_23, %c0_24, %c0_25] : memref<4x8x1xf32, #tpu.memory_space<vmem>>, vector<1x8x1xf32>
      %60 = vector.shape_cast %59 : vector<1x8x1xf32> to vector<8x1xf32>
      %cst_26 = arith.constant dense<0xFF800000> : vector<8xf32>
      %61 = vector.multi_reduction <maximumf>, %58, %cst_26 [1] : vector<8x8xf32> to vector<8xf32>
      %62 = vector.shape_cast %61 : vector<8xf32> to vector<8x1xf32>
      %63 = arith.maximumf %60, %62 : vector<8x1xf32>
      %64 = arith.subf %60, %63 : vector<8x1xf32>
      %65 = math.exp %64 : vector<8x1xf32>
      %66 = vector.broadcast %63 : vector<8x1xf32> to vector<8x8xf32>
      %67 = arith.subf %58, %66 : vector<8x8xf32>
      %68 = math.exp %67 : vector<8x8xf32>
      %c0_27 = arith.constant 0 : index
      %c0_28 = arith.constant 0 : index
      %c0_29 = arith.constant 0 : index
      %69 = vector.load %arg9[%c0_27, %c0_28, %c0_29] : memref<4x8x1xf32, #tpu.memory_space<vmem>>, vector<1x8x1xf32>
      %70 = vector.shape_cast %69 : vector<1x8x1xf32> to vector<8x1xf32>
      %71 = arith.mulf %65, %70 : vector<8x1xf32>
      %cst_30 = arith.constant dense<0.000000e+00> : vector<8xf32>
      %72 = vector.multi_reduction <add>, %68, %cst_30 [1] : vector<8x8xf32> to vector<8xf32>
      %73 = vector.shape_cast %72 : vector<8xf32> to vector<8x1xf32>
      %74 = arith.addf %71, %73 : vector<8x1xf32>
      %c0_31 = arith.constant 0 : index
      %c0_32 = arith.constant 0 : index
      %c0_33 = arith.constant 0 : index
      %75 = vector.load %arg9[%c0_31, %c0_32, %c0_33] : memref<4x8x1xf32, #tpu.memory_space<vmem>>, vector<1x8x1xf32>
      %76 = vector.shape_cast %75 : vector<1x8x1xf32> to vector<8x1xf32>
      %77 = vector.shape_cast %74 : vector<8x1xf32> to vector<1x8x1xf32>
      tpu.vector_store %arg9[%c0_31, %c0_32, %c0_33], %77 {strides = array<i32>} : memref<4x8x1xf32, #tpu.memory_space<vmem>>, vector<1x8x1xf32>,
      %c0_34 = arith.constant 0 : index
      %c0_35 = arith.constant 0 : index
      %c0_36 = arith.constant 0 : index
      %78 = vector.load %arg10[%c0_34, %c0_35, %c0_36] : memref<4x8x8xf32, #tpu.memory_space<vmem>>, vector<1x8x8xf32>
      %79 = vector.shape_cast %78 : vector<1x8x8xf32> to vector<8x8xf32>
      %80 = vector.broadcast %65 : vector<8x1xf32> to vector<8x8xf32>
      %81 = arith.mulf %80, %79 : vector<8x8xf32>
      %cst_37 = arith.constant dense<0.000000e+00> : vector<8x8xf32>
      %82 = tpu.matmul %68, %28, %cst_37 {dimension_numbers = #tpu.dot_dimension_numbers<[1], [0], [0], [1], [0, 0, 1, 1], [], []>} : vector<8x8xf32>, vector<8x8xf32>, vector<8x8xf32> -> vector<8x8xf32>
      %83 = arith.addf %81, %82 : vector<8x8xf32>
      %c0_38 = arith.constant 0 : index
      %c0_39 = arith.constant 0 : index
      %c0_40 = arith.constant 0 : index
      %84 = vector.load %arg10[%c0_38, %c0_39, %c0_40] : memref<4x8x8xf32, #tpu.memory_space<vmem>>, vector<1x8x8xf32>
      %85 = vector.shape_cast %84 : vector<1x8x8xf32> to vector<8x8xf32>
      %86 = vector.shape_cast %83 : vector<8x8xf32> to vector<1x8x8xf32>
      tpu.vector_store %arg10[%c0_38, %c0_39, %c0_40], %86 {strides = array<i32>} : memref<4x8x8xf32, #tpu.memory_space<vmem>>, vector<1x8x8xf32>,
      %c0_41 = arith.constant 0 : index
      %c0_42 = arith.constant 0 : index
      %c0_43 = arith.constant 0 : index
      %87 = vector.load %arg8[%c0_41, %c0_42, %c0_43] : memref<4x8x1xf32, #tpu.memory_space<vmem>>, vector<1x8x1xf32>
      %88 = vector.shape_cast %87 : vector<1x8x1xf32> to vector<8x1xf32>
      %89 = vector.shape_cast %63 : vector<8x1xf32> to vector<1x8x1xf32>
      tpu.vector_store %arg8[%c0_41, %c0_42, %c0_43], %89 {strides = array<i32>} : memref<4x8x1xf32, #tpu.memory_space<vmem>>, vector<1x8x1xf32>,
      %90 = vector.extract_strided_slice %20 {offsets = [0, 8], sizes = [8, 8], strides = [1, 1]} : vector<8x32xf32> to vector<8x8xf32>
      %91 = vector.extract_strided_slice %22 {offsets = [0, 8], sizes = [8, 8], strides = [1, 1]} : vector<8x32xf32> to vector<8x8xf32>
      %92 = vector.extract_strided_slice %24 {offsets = [0, 8], sizes = [8, 8], strides = [1, 1]} : vector<8x32xf32> to vector<8x8xf32>
      %93 = vector.extract_strided_slice %25 {offsets = [0, 8], sizes = [1, 8], strides = [1, 1]} : vector<1x32xf32> to vector<1x8xf32>
      %94 = arith.mulf %90, %90 : vector<8x8xf32>
      %cst_44 = arith.constant dense<0.000000e+00> : vector<8xf32>
      %95 = vector.multi_reduction <add>, %94, %cst_44 [1] : vector<8x8xf32> to vector<8xf32>
      %96 = vector.shape_cast %95 : vector<8xf32> to vector<8x1xf32>
      %cst_45 = arith.constant 8.000000e+00 : f32
      %97 = vector.broadcast %cst_45 : f32 to vector<8x1xf32>
      %98 = arith.divf %96, %97 : vector<8x1xf32>
      %cst_46 = arith.constant 9.99999997E-7 : f32
      %99 = vector.broadcast %cst_46 : f32 to vector<8x1xf32>
      %100 = arith.addf %98, %99 : vector<8x1xf32>
      %101 = math.rsqrt %100 : vector<8x1xf32>
      %102 = vector.broadcast %101 : vector<8x1xf32> to vector<8x8xf32>
      %103 = arith.mulf %90, %102 : vector<8x8xf32>
      %104 = vector.broadcast %93 : vector<1x8xf32> to vector<8x8xf32>
      %105 = arith.mulf %103, %104 : vector<8x8xf32>
      %106 = arith.mulf %91, %91 : vector<8x8xf32>
      %cst_47 = arith.constant dense<0.000000e+00> : vector<8xf32>
      %107 = vector.multi_reduction <add>, %106, %cst_47 [1] : vector<8x8xf32> to vector<8xf32>
      %108 = vector.shape_cast %107 : vector<8xf32> to vector<8x1xf32>
      %cst_48 = arith.constant 8.000000e+00 : f32
      %109 = vector.broadcast %cst_48 : f32 to vector<8x1xf32>
      %110 = arith.divf %108, %109 : vector<8x1xf32>
      %cst_49 = arith.constant 9.99999997E-7 : f32
      %111 = vector.broadcast %cst_49 : f32 to vector<8x1xf32>
      %112 = arith.addf %110, %111 : vector<8x1xf32>
      %113 = math.rsqrt %112 : vector<8x1xf32>
      %114 = vector.broadcast %113 : vector<8x1xf32> to vector<8x8xf32>
      %115 = arith.mulf %91, %114 : vector<8x8xf32>
      %116 = vector.broadcast %93 : vector<1x8xf32> to vector<8x8xf32>
      %117 = arith.mulf %115, %116 : vector<8x8xf32>
      %cst_50 = arith.constant dense<0.000000e+00> : vector<8x8xf32>
      %118 = tpu.matmul %105, %117, %cst_50 {dimension_numbers = #tpu.dot_dimension_numbers<[1], [1], [0], [0], [0, 0, 1, 0], [], []>} : vector<8x8xf32>, vector<8x8xf32>, vector<8x8xf32> -> vector<8x8xf32>
      %cst_51 = arith.constant 0.353553385 : f32
      %119 = vector.broadcast %cst_51 : f32 to vector<8x8xf32>
      %120 = arith.mulf %118, %119 : vector<8x8xf32>
      %cst_52 = arith.constant 0xFF800000 : f32
      %121 = vector.broadcast %cst_52 : f32 to vector<8x8xf32>
      %122 = arith.select %18, %120, %121 : vector<8x8xi1>, vector<8x8xf32>
      %c1 = arith.constant 1 : index
      %c0_53 = arith.constant 0 : index
      %c0_54 = arith.constant 0 : index
      %123 = vector.load %arg8[%c1, %c0_53, %c0_54] : memref<4x8x1xf32, #tpu.memory_space<vmem>>, vector<1x8x1xf32>
      %124 = vector.shape_cast %123 : vector<1x8x1xf32> to vector<8x1xf32>
      %cst_55 = arith.constant dense<0xFF800000> : vector<8xf32>
      %125 = vector.multi_reduction <maximumf>, %122, %cst_55 [1] : vector<8x8xf32> to vector<8xf32>
      %126 = vector.shape_cast %125 : vector<8xf32> to vector<8x1xf32>
      %127 = arith.maximumf %124, %126 : vector<8x1xf32>
      %128 = arith.subf %124, %127 : vector<8x1xf32>
      %129 = math.exp %128 : vector<8x1xf32>
      %130 = vector.broadcast %127 : vector<8x1xf32> to vector<8x8xf32>
      %131 = arith.subf %122, %130 : vector<8x8xf32>
      %132 = math.exp %131 : vector<8x8xf32>
      %c1_56 = arith.constant 1 : index
      %c0_57 = arith.constant 0 : index
      %c0_58 = arith.constant 0 : index
      %133 = vector.load %arg9[%c1_56, %c0_57, %c0_58] : memref<4x8x1xf32, #tpu.memory_space<vmem>>, vector<1x8x1xf32>
      %134 = vector.shape_cast %133 : vector<1x8x1xf32> to vector<8x1xf32>
      %135 = arith.mulf %129, %134 : vector<8x1xf32>
      %cst_59 = arith.constant dense<0.000000e+00> : vector<8xf32>
      %136 = vector.multi_reduction <add>, %132, %cst_59 [1] : vector<8x8xf32> to vector<8xf32>
      %137 = vector.shape_cast %136 : vector<8xf32> to vector<8x1xf32>
      %138 = arith.addf %135, %137 : vector<8x1xf32>
      %c1_60 = arith.constant 1 : index
      %c0_61 = arith.constant 0 : index
      %c0_62 = arith.constant 0 : index
      %139 = vector.load %arg9[%c1_60, %c0_61, %c0_62] : memref<4x8x1xf32, #tpu.memory_space<vmem>>, vector<1x8x1xf32>
      %140 = vector.shape_cast %139 : vector<1x8x1xf32> to vector<8x1xf32>
      %141 = vector.shape_cast %138 : vector<8x1xf32> to vector<1x8x1xf32>
      tpu.vector_store %arg9[%c1_60, %c0_61, %c0_62], %141 {strides = array<i32>} : memref<4x8x1xf32, #tpu.memory_space<vmem>>, vector<1x8x1xf32>,
      %c1_63 = arith.constant 1 : index
      %c0_64 = arith.constant 0 : index
      %c0_65 = arith.constant 0 : index
      %142 = vector.load %arg10[%c1_63, %c0_64, %c0_65] : memref<4x8x8xf32, #tpu.memory_space<vmem>>, vector<1x8x8xf32>
      %143 = vector.shape_cast %142 : vector<1x8x8xf32> to vector<8x8xf32>
      %144 = vector.broadcast %129 : vector<8x1xf32> to vector<8x8xf32>
      %145 = arith.mulf %144, %143 : vector<8x8xf32>
      %cst_66 = arith.constant dense<0.000000e+00> : vector<8x8xf32>
      %146 = tpu.matmul %132, %92, %cst_66 {dimension_numbers = #tpu.dot_dimension_numbers<[1], [0], [0], [1], [0, 0, 1, 1], [], []>} : vector<8x8xf32>, vector<8x8xf32>, vector<8x8xf32> -> vector<8x8xf32>
      %147 = arith.addf %145, %146 : vector<8x8xf32>
      %c1_67 = arith.constant 1 : index
      %c0_68 = arith.constant 0 : index
      %c0_69 = arith.constant 0 : index
      %148 = vector.load %arg10[%c1_67, %c0_68, %c0_69] : memref<4x8x8xf32, #tpu.memory_space<vmem>>, vector<1x8x8xf32>
      %149 = vector.shape_cast %148 : vector<1x8x8xf32> to vector<8x8xf32>
      %150 = vector.shape_cast %147 : vector<8x8xf32> to vector<1x8x8xf32>
      tpu.vector_store %arg10[%c1_67, %c0_68, %c0_69], %150 {strides = array<i32>} : memref<4x8x8xf32, #tpu.memory_space<vmem>>, vector<1x8x8xf32>,
      %c1_70 = arith.constant 1 : index
      %c0_71 = arith.constant 0 : index
      %c0_72 = arith.constant 0 : index
      %151 = vector.load %arg8[%c1_70, %c0_71, %c0_72] : memref<4x8x1xf32, #tpu.memory_space<vmem>>, vector<1x8x1xf32>
      %152 = vector.shape_cast %151 : vector<1x8x1xf32> to vector<8x1xf32>
      %153 = vector.shape_cast %127 : vector<8x1xf32> to vector<1x8x1xf32>
      tpu.vector_store %arg8[%c1_70, %c0_71, %c0_72], %153 {strides = array<i32>} : memref<4x8x1xf32, #tpu.memory_space<vmem>>, vector<1x8x1xf32>,
      %154 = vector.extract_strided_slice %20 {offsets = [0, 16], sizes = [8, 8], strides = [1, 1]} : vector<8x32xf32> to vector<8x8xf32>
      %155 = vector.extract_strided_slice %22 {offsets = [0, 16], sizes = [8, 8], strides = [1, 1]} : vector<8x32xf32> to vector<8x8xf32>
      %156 = vector.extract_strided_slice %24 {offsets = [0, 16], sizes = [8, 8], strides = [1, 1]} : vector<8x32xf32> to vector<8x8xf32>
      %157 = vector.extract_strided_slice %25 {offsets = [0, 16], sizes = [1, 8], strides = [1, 1]} : vector<1x32xf32> to vector<1x8xf32>
      %158 = arith.mulf %154, %154 : vector<8x8xf32>
      %cst_73 = arith.constant dense<0.000000e+00> : vector<8xf32>
      %159 = vector.multi_reduction <add>, %158, %cst_73 [1] : vector<8x8xf32> to vector<8xf32>
      %160 = vector.shape_cast %159 : vector<8xf32> to vector<8x1xf32>
      %cst_74 = arith.constant 8.000000e+00 : f32
      %161 = vector.broadcast %cst_74 : f32 to vector<8x1xf32>
      %162 = arith.divf %160, %161 : vector<8x1xf32>
      %cst_75 = arith.constant 9.99999997E-7 : f32
      %163 = vector.broadcast %cst_75 : f32 to vector<8x1xf32>
      %164 = arith.addf %162, %163 : vector<8x1xf32>
      %165 = math.rsqrt %164 : vector<8x1xf32>
      %166 = vector.broadcast %165 : vector<8x1xf32> to vector<8x8xf32>
      %167 = arith.mulf %154, %166 : vector<8x8xf32>
      %168 = vector.broadcast %157 : vector<1x8xf32> to vector<8x8xf32>
      %169 = arith.mulf %167, %168 : vector<8x8xf32>
      %170 = arith.mulf %155, %155 : vector<8x8xf32>
      %cst_76 = arith.constant dense<0.000000e+00> : vector<8xf32>
      %171 = vector.multi_reduction <add>, %170, %cst_76 [1] : vector<8x8xf32> to vector<8xf32>
      %172 = vector.shape_cast %171 : vector<8xf32> to vector<8x1xf32>
      %cst_77 = arith.constant 8.000000e+00 : f32
      %173 = vector.broadcast %cst_77 : f32 to vector<8x1xf32>
      %174 = arith.divf %172, %173 : vector<8x1xf32>
      %cst_78 = arith.constant 9.99999997E-7 : f32
      %175 = vector.broadcast %cst_78 : f32 to vector<8x1xf32>
      %176 = arith.addf %174, %175 : vector<8x1xf32>
      %177 = math.rsqrt %176 : vector<8x1xf32>
      %178 = vector.broadcast %177 : vector<8x1xf32> to vector<8x8xf32>
      %179 = arith.mulf %155, %178 : vector<8x8xf32>
      %180 = vector.broadcast %157 : vector<1x8xf32> to vector<8x8xf32>
      %181 = arith.mulf %179, %180 : vector<8x8xf32>
      %cst_79 = arith.constant dense<0.000000e+00> : vector<8x8xf32>
      %182 = tpu.matmul %169, %181, %cst_79 {dimension_numbers = #tpu.dot_dimension_numbers<[1], [1], [0], [0], [0, 0, 1, 0], [], []>} : vector<8x8xf32>, vector<8x8xf32>, vector<8x8xf32> -> vector<8x8xf32>
      %cst_80 = arith.constant 0.353553385 : f32
      %183 = vector.broadcast %cst_80 : f32 to vector<8x8xf32>
      %184 = arith.mulf %182, %183 : vector<8x8xf32>
      %cst_81 = arith.constant 0xFF800000 : f32
      %185 = vector.broadcast %cst_81 : f32 to vector<8x8xf32>
      %186 = arith.select %18, %184, %185 : vector<8x8xi1>, vector<8x8xf32>
      %c2 = arith.constant 2 : index
      %c0_82 = arith.constant 0 : index
      %c0_83 = arith.constant 0 : index
      %187 = vector.load %arg8[%c2, %c0_82, %c0_83] : memref<4x8x1xf32, #tpu.memory_space<vmem>>, vector<1x8x1xf32>
      %188 = vector.shape_cast %187 : vector<1x8x1xf32> to vector<8x1xf32>
      %cst_84 = arith.constant dense<0xFF800000> : vector<8xf32>
      %189 = vector.multi_reduction <maximumf>, %186, %cst_84 [1] : vector<8x8xf32> to vector<8xf32>
      %190 = vector.shape_cast %189 : vector<8xf32> to vector<8x1xf32>
      %191 = arith.maximumf %188, %190 : vector<8x1xf32>
      %192 = arith.subf %188, %191 : vector<8x1xf32>
      %193 = math.exp %192 : vector<8x1xf32>
      %194 = vector.broadcast %191 : vector<8x1xf32> to vector<8x8xf32>
      %195 = arith.subf %186, %194 : vector<8x8xf32>
      %196 = math.exp %195 : vector<8x8xf32>
      %c2_85 = arith.constant 2 : index
      %c0_86 = arith.constant 0 : index
      %c0_87 = arith.constant 0 : index
      %197 = vector.load %arg9[%c2_85, %c0_86, %c0_87] : memref<4x8x1xf32, #tpu.memory_space<vmem>>, vector<1x8x1xf32>
      %198 = vector.shape_cast %197 : vector<1x8x1xf32> to vector<8x1xf32>
      %199 = arith.mulf %193, %198 : vector<8x1xf32>
      %cst_88 = arith.constant dense<0.000000e+00> : vector<8xf32>
      %200 = vector.multi_reduction <add>, %196, %cst_88 [1] : vector<8x8xf32> to vector<8xf32>
      %201 = vector.shape_cast %200 : vector<8xf32> to vector<8x1xf32>
      %202 = arith.addf %199, %201 : vector<8x1xf32>
      %c2_89 = arith.constant 2 : index
      %c0_90 = arith.constant 0 : index
      %c0_91 = arith.constant 0 : index
      %203 = vector.load %arg9[%c2_89, %c0_90, %c0_91] : memref<4x8x1xf32, #tpu.memory_space<vmem>>, vector<1x8x1xf32>
      %204 = vector.shape_cast %203 : vector<1x8x1xf32> to vector<8x1xf32>
      %205 = vector.shape_cast %202 : vector<8x1xf32> to vector<1x8x1xf32>
      tpu.vector_store %arg9[%c2_89, %c0_90, %c0_91], %205 {strides = array<i32>} : memref<4x8x1xf32, #tpu.memory_space<vmem>>, vector<1x8x1xf32>,
      %c2_92 = arith.constant 2 : index
      %c0_93 = arith.constant 0 : index
      %c0_94 = arith.constant 0 : index
      %206 = vector.load %arg10[%c2_92, %c0_93, %c0_94] : memref<4x8x8xf32, #tpu.memory_space<vmem>>, vector<1x8x8xf32>
      %207 = vector.shape_cast %206 : vector<1x8x8xf32> to vector<8x8xf32>
      %208 = vector.broadcast %193 : vector<8x1xf32> to vector<8x8xf32>
      %209 = arith.mulf %208, %207 : vector<8x8xf32>
      %cst_95 = arith.constant dense<0.000000e+00> : vector<8x8xf32>
      %210 = tpu.matmul %196, %156, %cst_95 {dimension_numbers = #tpu.dot_dimension_numbers<[1], [0], [0], [1], [0, 0, 1, 1], [], []>} : vector<8x8xf32>, vector<8x8xf32>, vector<8x8xf32> -> vector<8x8xf32>
      %211 = arith.addf %209, %210 : vector<8x8xf32>
      %c2_96 = arith.constant 2 : index
      %c0_97 = arith.constant 0 : index
      %c0_98 = arith.constant 0 : index
      %212 = vector.load %arg10[%c2_96, %c0_97, %c0_98] : memref<4x8x8xf32, #tpu.memory_space<vmem>>, vector<1x8x8xf32>
      %213 = vector.shape_cast %212 : vector<1x8x8xf32> to vector<8x8xf32>
      %214 = vector.shape_cast %211 : vector<8x8xf32> to vector<1x8x8xf32>
      tpu.vector_store %arg10[%c2_96, %c0_97, %c0_98], %214 {strides = array<i32>} : memref<4x8x8xf32, #tpu.memory_space<vmem>>, vector<1x8x8xf32>,
      %c2_99 = arith.constant 2 : index
      %c0_100 = arith.constant 0 : index
      %c0_101 = arith.constant 0 : index
      %215 = vector.load %arg8[%c2_99, %c0_100, %c0_101] : memref<4x8x1xf32, #tpu.memory_space<vmem>>, vector<1x8x1xf32>
      %216 = vector.shape_cast %215 : vector<1x8x1xf32> to vector<8x1xf32>
      %217 = vector.shape_cast %191 : vector<8x1xf32> to vector<1x8x1xf32>
      tpu.vector_store %arg8[%c2_99, %c0_100, %c0_101], %217 {strides = array<i32>} : memref<4x8x1xf32, #tpu.memory_space<vmem>>, vector<1x8x1xf32>,
      %218 = vector.extract_strided_slice %20 {offsets = [0, 24], sizes = [8, 8], strides = [1, 1]} : vector<8x32xf32> to vector<8x8xf32>
      %219 = vector.extract_strided_slice %22 {offsets = [0, 24], sizes = [8, 8], strides = [1, 1]} : vector<8x32xf32> to vector<8x8xf32>
      %220 = vector.extract_strided_slice %24 {offsets = [0, 24], sizes = [8, 8], strides = [1, 1]} : vector<8x32xf32> to vector<8x8xf32>
      %221 = vector.extract_strided_slice %25 {offsets = [0, 24], sizes = [1, 8], strides = [1, 1]} : vector<1x32xf32> to vector<1x8xf32>
      %222 = arith.mulf %218, %218 : vector<8x8xf32>
      %cst_102 = arith.constant dense<0.000000e+00> : vector<8xf32>
      %223 = vector.multi_reduction <add>, %222, %cst_102 [1] : vector<8x8xf32> to vector<8xf32>
      %224 = vector.shape_cast %223 : vector<8xf32> to vector<8x1xf32>
      %cst_103 = arith.constant 8.000000e+00 : f32
      %225 = vector.broadcast %cst_103 : f32 to vector<8x1xf32>
      %226 = arith.divf %224, %225 : vector<8x1xf32>
      %cst_104 = arith.constant 9.99999997E-7 : f32
      %227 = vector.broadcast %cst_104 : f32 to vector<8x1xf32>
      %228 = arith.addf %226, %227 : vector<8x1xf32>
      %229 = math.rsqrt %228 : vector<8x1xf32>
      %230 = vector.broadcast %229 : vector<8x1xf32> to vector<8x8xf32>
      %231 = arith.mulf %218, %230 : vector<8x8xf32>
      %232 = vector.broadcast %221 : vector<1x8xf32> to vector<8x8xf32>
      %233 = arith.mulf %231, %232 : vector<8x8xf32>
      %234 = arith.mulf %219, %219 : vector<8x8xf32>
      %cst_105 = arith.constant dense<0.000000e+00> : vector<8xf32>
      %235 = vector.multi_reduction <add>, %234, %cst_105 [1] : vector<8x8xf32> to vector<8xf32>
      %236 = vector.shape_cast %235 : vector<8xf32> to vector<8x1xf32>
      %cst_106 = arith.constant 8.000000e+00 : f32
      %237 = vector.broadcast %cst_106 : f32 to vector<8x1xf32>
      %238 = arith.divf %236, %237 : vector<8x1xf32>
      %cst_107 = arith.constant 9.99999997E-7 : f32
      %239 = vector.broadcast %cst_107 : f32 to vector<8x1xf32>
      %240 = arith.addf %238, %239 : vector<8x1xf32>
      %241 = math.rsqrt %240 : vector<8x1xf32>
      %242 = vector.broadcast %241 : vector<8x1xf32> to vector<8x8xf32>
      %243 = arith.mulf %219, %242 : vector<8x8xf32>
      %244 = vector.broadcast %221 : vector<1x8xf32> to vector<8x8xf32>
      %245 = arith.mulf %243, %244 : vector<8x8xf32>
      %cst_108 = arith.constant dense<0.000000e+00> : vector<8x8xf32>
      %246 = tpu.matmul %233, %245, %cst_108 {dimension_numbers = #tpu.dot_dimension_numbers<[1], [1], [0], [0], [0, 0, 1, 0], [], []>} : vector<8x8xf32>, vector<8x8xf32>, vector<8x8xf32> -> vector<8x8xf32>
      %cst_109 = arith.constant 0.353553385 : f32
      %247 = vector.broadcast %cst_109 : f32 to vector<8x8xf32>
      %248 = arith.mulf %246, %247 : vector<8x8xf32>
      %cst_110 = arith.constant 0xFF800000 : f32
      %249 = vector.broadcast %cst_110 : f32 to vector<8x8xf32>
      %250 = arith.select %18, %248, %249 : vector<8x8xi1>, vector<8x8xf32>
      %c3 = arith.constant 3 : index
      %c0_111 = arith.constant 0 : index
      %c0_112 = arith.constant 0 : index
      %251 = vector.load %arg8[%c3, %c0_111, %c0_112] : memref<4x8x1xf32, #tpu.memory_space<vmem>>, vector<1x8x1xf32>
      %252 = vector.shape_cast %251 : vector<1x8x1xf32> to vector<8x1xf32>
      %cst_113 = arith.constant dense<0xFF800000> : vector<8xf32>
      %253 = vector.multi_reduction <maximumf>, %250, %cst_113 [1] : vector<8x8xf32> to vector<8xf32>
      %254 = vector.shape_cast %253 : vector<8xf32> to vector<8x1xf32>
      %255 = arith.maximumf %252, %254 : vector<8x1xf32>
      %256 = arith.subf %252, %255 : vector<8x1xf32>
      %257 = math.exp %256 : vector<8x1xf32>
      %258 = vector.broadcast %255 : vector<8x1xf32> to vector<8x8xf32>
      %259 = arith.subf %250, %258 : vector<8x8xf32>
      %260 = math.exp %259 : vector<8x8xf32>
      %c3_114 = arith.constant 3 : index
      %c0_115 = arith.constant 0 : index
      %c0_116 = arith.constant 0 : index
      %261 = vector.load %arg9[%c3_114, %c0_115, %c0_116] : memref<4x8x1xf32, #tpu.memory_space<vmem>>, vector<1x8x1xf32>
      %262 = vector.shape_cast %261 : vector<1x8x1xf32> to vector<8x1xf32>
      %263 = arith.mulf %257, %262 : vector<8x1xf32>
      %cst_117 = arith.constant dense<0.000000e+00> : vector<8xf32>
      %264 = vector.multi_reduction <add>, %260, %cst_117 [1] : vector<8x8xf32> to vector<8xf32>
      %265 = vector.shape_cast %264 : vector<8xf32> to vector<8x1xf32>
      %266 = arith.addf %263, %265 : vector<8x1xf32>
      %c3_118 = arith.constant 3 : index
      %c0_119 = arith.constant 0 : index
      %c0_120 = arith.constant 0 : index
      %267 = vector.load %arg9[%c3_118, %c0_119, %c0_120] : memref<4x8x1xf32, #tpu.memory_space<vmem>>, vector<1x8x1xf32>
      %268 = vector.shape_cast %267 : vector<1x8x1xf32> to vector<8x1xf32>
      %269 = vector.shape_cast %266 : vector<8x1xf32> to vector<1x8x1xf32>
      tpu.vector_store %arg9[%c3_118, %c0_119, %c0_120], %269 {strides = array<i32>} : memref<4x8x1xf32, #tpu.memory_space<vmem>>, vector<1x8x1xf32>,
      %c3_121 = arith.constant 3 : index
      %c0_122 = arith.constant 0 : index
      %c0_123 = arith.constant 0 : index
      %270 = vector.load %arg10[%c3_121, %c0_122, %c0_123] : memref<4x8x8xf32, #tpu.memory_space<vmem>>, vector<1x8x8xf32>
      %271 = vector.shape_cast %270 : vector<1x8x8xf32> to vector<8x8xf32>
      %272 = vector.broadcast %257 : vector<8x1xf32> to vector<8x8xf32>
      %273 = arith.mulf %272, %271 : vector<8x8xf32>
      %cst_124 = arith.constant dense<0.000000e+00> : vector<8x8xf32>
      %274 = tpu.matmul %260, %220, %cst_124 {dimension_numbers = #tpu.dot_dimension_numbers<[1], [0], [0], [1], [0, 0, 1, 1], [], []>} : vector<8x8xf32>, vector<8x8xf32>, vector<8x8xf32> -> vector<8x8xf32>
      %275 = arith.addf %273, %274 : vector<8x8xf32>
      %c3_125 = arith.constant 3 : index
      %c0_126 = arith.constant 0 : index
      %c0_127 = arith.constant 0 : index
      %276 = vector.load %arg10[%c3_125, %c0_126, %c0_127] : memref<4x8x8xf32, #tpu.memory_space<vmem>>, vector<1x8x8xf32>
      %277 = vector.shape_cast %276 : vector<1x8x8xf32> to vector<8x8xf32>
      %278 = vector.shape_cast %275 : vector<8x8xf32> to vector<1x8x8xf32>
      tpu.vector_store %arg10[%c3_125, %c0_126, %c0_127], %278 {strides = array<i32>} : memref<4x8x8xf32, #tpu.memory_space<vmem>>, vector<1x8x8xf32>,
      %c3_128 = arith.constant 3 : index
      %c0_129 = arith.constant 0 : index
      %c0_130 = arith.constant 0 : index
      %279 = vector.load %arg8[%c3_128, %c0_129, %c0_130] : memref<4x8x1xf32, #tpu.memory_space<vmem>>, vector<1x8x1xf32>
      %280 = vector.shape_cast %279 : vector<1x8x1xf32> to vector<8x1xf32>
      %281 = vector.shape_cast %255 : vector<8x1xf32> to vector<1x8x1xf32>
      tpu.vector_store %arg8[%c3_128, %c0_129, %c0_130], %281 {strides = array<i32>} : memref<4x8x1xf32, #tpu.memory_space<vmem>>, vector<1x8x1xf32>,
    } else {
    }
    %c0_i32_3 = arith.constant 0 : i32
    %9 = arith.cmpi eq, %arg2, %c0_i32_3 : i32
    %10 = arith.extui %9 : i1 to i32
    %c0_i32_4 = arith.constant 0 : i32
    %11 = arith.cmpi ne, %10, %c0_i32_4 : i32
    scf.if %11 {
      %c0 = arith.constant 0 : index
      %c0_5 = arith.constant 0 : index
      %c0_6 = arith.constant 0 : index
      %12 = vector.load %arg9[%c0, %c0_5, %c0_6] : memref<4x8x1xf32, #tpu.memory_space<vmem>>, vector<1x8x1xf32>
      %13 = vector.shape_cast %12 : vector<1x8x1xf32> to vector<8x1xf32>
      %14 = tpu.reciprocal %13 {approx = true} : vector<8x1xf32> -> vector<8x1xf32>
      %c0_7 = arith.constant 0 : index
      %c0_8 = arith.constant 0 : index
      %c0_9 = arith.constant 0 : index
      %15 = vector.load %arg10[%c0_7, %c0_8, %c0_9] : memref<4x8x8xf32, #tpu.memory_space<vmem>>, vector<1x8x8xf32>
      %16 = vector.shape_cast %15 : vector<1x8x8xf32> to vector<8x8xf32>
      %17 = vector.broadcast %14 : vector<8x1xf32> to vector<8x8xf32>
      %18 = arith.mulf %16, %17 : vector<8x8xf32>
      %c0_10 = arith.constant 0 : index
      %c0_11 = arith.constant 0 : index
      %c0_12 = arith.constant 0 : index
      %19 = vector.load %arg7[%c0_10, %c0_11, %c0_12] : memref<1x8x32xf32, #tpu.memory_space<vmem>>, vector<1x8x8xf32>
      %20 = vector.shape_cast %19 : vector<1x8x8xf32> to vector<8x8xf32>
      %21 = vector.shape_cast %18 : vector<8x8xf32> to vector<1x8x8xf32>
      tpu.vector_store %arg7[%c0_10, %c0_11, %c0_12], %21 {strides = array<i32>} : memref<1x8x32xf32, #tpu.memory_space<vmem>>, vector<1x8x8xf32>,
      %c1 = arith.constant 1 : index
      %c0_13 = arith.constant 0 : index
      %c0_14 = arith.constant 0 : index
      %22 = vector.load %arg9[%c1, %c0_13, %c0_14] : memref<4x8x1xf32, #tpu.memory_space<vmem>>, vector<1x8x1xf32>
      %23 = vector.shape_cast %22 : vector<1x8x1xf32> to vector<8x1xf32>
      %24 = tpu.reciprocal %23 {approx = true} : vector<8x1xf32> -> vector<8x1xf32>
      %c1_15 = arith.constant 1 : index
      %c0_16 = arith.constant 0 : index
      %c0_17 = arith.constant 0 : index
      %25 = vector.load %arg10[%c1_15, %c0_16, %c0_17] : memref<4x8x8xf32, #tpu.memory_space<vmem>>, vector<1x8x8xf32>
      %26 = vector.shape_cast %25 : vector<1x8x8xf32> to vector<8x8xf32>
      %27 = vector.broadcast %24 : vector<8x1xf32> to vector<8x8xf32>
      %28 = arith.mulf %26, %27 : vector<8x8xf32>
      %c0_18 = arith.constant 0 : index
      %c0_19 = arith.constant 0 : index
      %c8 = arith.constant 8 : index
      %29 = vector.load %arg7[%c0_18, %c0_19, %c8] : memref<1x8x32xf32, #tpu.memory_space<vmem>>, vector<1x8x8xf32>
      %30 = vector.shape_cast %29 : vector<1x8x8xf32> to vector<8x8xf32>
      %31 = vector.shape_cast %28 : vector<8x8xf32> to vector<1x8x8xf32>
      tpu.vector_store %arg7[%c0_18, %c0_19, %c8], %31 {strides = array<i32>} : memref<1x8x32xf32, #tpu.memory_space<vmem>>, vector<1x8x8xf32>,
      %c2 = arith.constant 2 : index
      %c0_20 = arith.constant 0 : index
      %c0_21 = arith.constant 0 : index
      %32 = vector.load %arg9[%c2, %c0_20, %c0_21] : memref<4x8x1xf32, #tpu.memory_space<vmem>>, vector<1x8x1xf32>
      %33 = vector.shape_cast %32 : vector<1x8x1xf32> to vector<8x1xf32>
      %34 = tpu.reciprocal %33 {approx = true} : vector<8x1xf32> -> vector<8x1xf32>
      %c2_22 = arith.constant 2 : index
      %c0_23 = arith.constant 0 : index
      %c0_24 = arith.constant 0 : index
      %35 = vector.load %arg10[%c2_22, %c0_23, %c0_24] : memref<4x8x8xf32, #tpu.memory_space<vmem>>, vector<1x8x8xf32>
      %36 = vector.shape_cast %35 : vector<1x8x8xf32> to vector<8x8xf32>
      %37 = vector.broadcast %34 : vector<8x1xf32> to vector<8x8xf32>
      %38 = arith.mulf %36, %37 : vector<8x8xf32>
      %c0_25 = arith.constant 0 : index
      %c0_26 = arith.constant 0 : index
      %c16 = arith.constant 16 : index
      %39 = vector.load %arg7[%c0_25, %c0_26, %c16] : memref<1x8x32xf32, #tpu.memory_space<vmem>>, vector<1x8x8xf32>
      %40 = vector.shape_cast %39 : vector<1x8x8xf32> to vector<8x8xf32>
      %41 = vector.shape_cast %38 : vector<8x8xf32> to vector<1x8x8xf32>
      tpu.vector_store %arg7[%c0_25, %c0_26, %c16], %41 {strides = array<i32>} : memref<1x8x32xf32, #tpu.memory_space<vmem>>, vector<1x8x8xf32>,
      %c3 = arith.constant 3 : index
      %c0_27 = arith.constant 0 : index
      %c0_28 = arith.constant 0 : index
      %42 = vector.load %arg9[%c3, %c0_27, %c0_28] : memref<4x8x1xf32, #tpu.memory_space<vmem>>, vector<1x8x1xf32>
      %43 = vector.shape_cast %42 : vector<1x8x1xf32> to vector<8x1xf32>
      %44 = tpu.reciprocal %43 {approx = true} : vector<8x1xf32> -> vector<8x1xf32>
      %c3_29 = arith.constant 3 : index
      %c0_30 = arith.constant 0 : index
      %c0_31 = arith.constant 0 : index
      %45 = vector.load %arg10[%c3_29, %c0_30, %c0_31] : memref<4x8x8xf32, #tpu.memory_space<vmem>>, vector<1x8x8xf32>
      %46 = vector.shape_cast %45 : vector<1x8x8xf32> to vector<8x8xf32>
      %47 = vector.broadcast %44 : vector<8x1xf32> to vector<8x8xf32>
      %48 = arith.mulf %46, %47 : vector<8x8xf32>
      %c0_32 = arith.constant 0 : index
      %c0_33 = arith.constant 0 : index
      %c24 = arith.constant 24 : index
      %49 = vector.load %arg7[%c0_32, %c0_33, %c24] : memref<1x8x32xf32, #tpu.memory_space<vmem>>, vector<1x8x8xf32>
      %50 = vector.shape_cast %49 : vector<1x8x8xf32> to vector<8x8xf32>
      %51 = vector.shape_cast %48 : vector<8x8xf32> to vector<1x8x8xf32>
      tpu.vector_store %arg7[%c0_32, %c0_33, %c24], %51 {strides = array<i32>} : memref<1x8x32xf32, #tpu.memory_space<vmem>>, vector<1x8x8xf32>,
    } else {
    }
    return
  }
  func.func @transform_0(%arg0: i32, %arg1: i32, %arg2: i32) -> (i32, i32, i32) {
    %c0_i32 = arith.constant 0 : i32
    %c0_i32_0 = arith.constant 0 : i32
    return %arg0, %arg1, %c0_i32 : i32, i32, i32
  }
  func.func @transform_1(%arg0: i32, %arg1: i32, %arg2: i32) -> (i32, i32, i32) {
    %0 = arith.minsi %arg2, %arg1 : i32
    %c0_i32 = arith.constant 0 : i32
    %c0_i32_0 = arith.constant 0 : i32
    return %arg0, %0, %c0_i32 : i32, i32, i32
  }
  func.func @transform_2(%arg0: i32, %arg1: i32, %arg2: i32) -> (i32, i32, i32) {
    %0 = arith.minsi %arg2, %arg1 : i32
    %c0_i32 = arith.constant 0 : i32
    %c0_i32_0 = arith.constant 0 : i32
    return %arg0, %0, %c0_i32 : i32, i32, i32
  }
  func.func @transform_3(%arg0: i32, %arg1: i32, %arg2: i32) -> (i32, i32) {
    %c0_i32 = arith.constant 0 : i32
    %c0_i32_0 = arith.constant 0 : i32
    %c0_i32_1 = arith.constant 0 : i32
    return %c0_i32, %c0_i32_0 : i32, i32
  }
  func.func @transform_4(%arg0: i32, %arg1: i32, %arg2: i32) -> (i32, i32, i32) {
    %c0_i32 = arith.constant 0 : i32
    %c0_i32_0 = arith.constant 0 : i32
    return %arg0, %arg1, %c0_i32 : i32, i32, i32
  }
}

</mosaic_0001>

<bundles_post_ra>
// kernel: mp_self_attention.5
= control target key start
LH: loop header
LB: loop body
LE: loop exit
PB: predicated region body
PF: predicated region fallthrough
CT: control target
= control target key end

     0   :  { %vm15_vm0 = vcmask 261120   ;;  %s422_s0 = inlined_call_operand.vmem [shape: f32[16,32], index: 0, kind: input, shape index: {}]   ;;  %s423_s1 = inlined_call_operand.vmem [shape: f32[128,32], index: 1, kind: input, shape index: {}]   ;;  %s424_s2 = inlined_call_operand.vmem [shape: f32[16,128], index: 2, kind: output, shape index: {}]  }
   0x1   :  { %v11_v0 = vld [vmem:[%s422_s0] sm:$0xff]  ;;  %vm325_vm1 = vmpackc.low %vm15_vm0, %vm15_vm0  ;;  %v12_v2 = vld [vmem:[%s422_s0 + $0x8] sm:$0xff] }
   0x2   :  { %v13_v3 = vmul.f32 %v11_v0, %v11_v0  ;;  %v14_v4 = vmul.f32 %v12_v2, %v12_v2  ;;  %v31_v5 = vld [vmem:[%s423_s1] sm:$0xff]  ;;  %v32_v6 = vld [vmem:[%s423_s1 + $0x8] sm:$0xff]  ;;  %v33_v7 = vld [vmem:[%s423_s1 + $0x10] sm:$0xff] }
   0x3   :  { %v253_v8 = vpack.c.bf16 %v32_v6, %v31_v5  ;;  %v34_v9 = vld [vmem:[%s423_s1 + $0x18] sm:$0xff]  ;;  %v35_v13 = vld [vmem:[%s423_s1 + $0x20] sm:$0xff]  ;;  %v36_v14 = vld [vmem:[%s423_s1 + $0x28] sm:$0xff] }
   0x4   :  { %v16_v10 = vsel %vm15_vm0, %v13_v3, 0.0  ;;  %v259_v11 = vpack.c.bf16 %v34_v9, %v33_v7  ;;  %v19_v12 = vsel %vm15_vm0, %v14_v4, 0.0  ;;  %v265_v15 = vpack.c.bf16 %v36_v14, %v35_v13  ;;  %v37_v16 = vld [vmem:[%s423_s1 + $0x30] sm:$0xff]  ;;  %v38_v17 = vld [vmem:[%s423_s1 + $0x38] sm:$0xff]  ;;  %v39_v19 = vld [vmem:[%s423_s1 + $0x40] sm:$0xff] }
   0x5   :  { %17 = vadd.xlane.f32.xlu0 %v16_v10  ;;  %255 = vmatprep.subr.msk.bf16.mxu0 %vm325_vm1, %v253_v8  ;;  %v271_v18 = vpack.c.bf16 %v38_v17, %v37_v16  ;;  %v40_v20 = vld [vmem:[%s423_s1 + $0x48] sm:$0xff]  ;;  %v41_v22 = vld [vmem:[%s423_s1 + $0x50] sm:$0xff]  ;;  %v42_v23 = vld [vmem:[%s423_s1 + $0x58] sm:$0xff] }
   0x6   :  { %258 = vmatpush3.bf16.xpose.msk.msra.mxu0 %vm325_vm1, %v253_v8  ;;  %v277_v21 = vpack.c.bf16 %v40_v20, %v39_v19  ;;  %v283_v24 = vpack.c.bf16 %v42_v23, %v41_v22  ;;  %v43_v25 = vld [vmem:[%s423_s1 + $0x60] sm:$0xff]  ;;  %v44_v26 = vld [vmem:[%s423_s1 + $0x68] sm:$0xff]  ;;  %v45_v28 = vld [vmem:[%s423_s1 + $0x70] sm:$0xff] }
   0x7   :  { %261 = vmatprep.subr.msk.bf16.mxu0 %vm325_vm1, %v259_v11  ;;  %v289_v27 = vpack.c.bf16 %v44_v26, %v43_v25  ;;  %v46_v29 = vld [vmem:[%s423_s1 + $0x78] sm:$0xff] }
   0x8   :  { %v295_v30 = vpack.c.bf16 %v46_v29, %v45_v28 }
   0x9   :  { %20 = vadd.xlane.f32.xlu0 %v19_v12 }
   0xe   :  { %264 = vmatpush3.bf16.xpose.msk.msra.mxu0 %vm325_vm1, %v259_v11 }
   0xf   :  { %267 = vmatprep.subr.msk.bf16.mxu0 %vm325_vm1, %v265_v15 }
  0x16   :  { %270 = vmatpush3.bf16.xpose.msk.msra.mxu0 %vm325_vm1, %v265_v15 }
  0x17   :  { %273 = vmatprep.subr.msk.bf16.mxu0 %vm325_vm1, %v271_v18 }
  0x1e   :  { %276 = vmatpush3.bf16.xpose.msk.msra.mxu0 %vm325_vm1, %v271_v18 }
  0x1f   :  { %279 = vmatprep.subr.msk.bf16.mxu0 %vm325_vm1, %v277_v21 }
  0x26   :  { %282 = vmatpush3.bf16.xpose.msk.msra.mxu0 %vm325_vm1, %v277_v21 }
  0x27   :  { %285 = vmatprep.subr.msk.bf16.mxu0 %vm325_vm1, %v283_v24 }
  0x2e   :  { %288 = vmatpush3.bf16.xpose.msk.msra.mxu0 %vm325_vm1, %v283_v24 }
  0x2f   :  { %291 = vmatprep.subr.msk.bf16.mxu0 %vm325_vm1, %v289_v27 }
  0x36   :  { %294 = vmatpush3.bf16.xpose.msk.msra.mxu0 %vm325_vm1, %v289_v27 }
  0x37   :  { %297 = vmatprep.subr.msk.bf16.mxu0 %vm325_vm1, %v295_v30 }
  0x3e   :  { %300 = vmatpush3.bf16.xpose.msk.msra.mxu0 %vm325_vm1, %v295_v30 }
  0x92   :  { %v18_v31 = vpop.xlane.xlu0 %17 }
  0x93   :  { %v23_v32 = vmul.f32 0.03125, %v18_v31 }
  0x95   :  { %v25_v33 = vadd.f32 1e-06, %v23_v32 }
  0x96   :  { %v21_v34 = vpop.xlane.xlu0 %20 }
  0x97   :  { %301 = vrsqrt.f32 %v25_v33  ;;  %v24_v35 = vmul.f32 0.03125, %v21_v34 }
  0x99   :  { %v26_v36 = vadd.f32 1e-06, %v24_v35 }
  0x9b   :  { %303 = vrsqrt.f32 %v26_v36 }
  0xa1   :  { %v302_v37 = vpop.eup %301 }
  0xa2   :  { %v29_v38 = vmul.f32 %v302_v37, %v11_v0 }
  0xa4   :  { %250 = vmatprep.mubr.msk.f32.mxu0 %vm15_vm0, %v29_v38 }
  0xa5   :  { %v304_v39 = vpop.eup %303 }
  0xa6   :  { %v30_v40 = vmul.f32 %v304_v39, %v12_v2 }
  0xa8   :  { %251 = vmatmul.mubr.msk.f32.vlgmr.msra.gmra.mrb[0].mxu0 %vm15_vm0, %v30_v40 }
 0x17b   :  { %v252_v41 = vpop.f32.mrb[0].mxu0 }
 0x17c   :  { %177 = vst [vmem:[%s424_s2 + $0x8] sm:$0xff] %v252_v41  ;;  %v167_v42 = vpop.f32.mrb[1].mxu0 }
 0x17d   :  { %176 = vst [vmem:[%s424_s2] sm:$0xff] %v167_v42 }

// kernel: mp_self_attention.3
= control target key start
LH: loop header
LB: loop body
LE: loop exit
PB: predicated region body
PF: predicated region fallthrough
CT: control target
= control target key end

     0   :  { %vm29_vm0 = vcmask 261120   ;;  %s399_s1 = inlined_call_operand.vmem [shape: f32[128,32], index: 1, kind: input, shape index: {}]   ;;  %s400_s0 = inlined_call_operand.vmem [shape: f32[16,32], index: 0, kind: input, shape index: {}]   ;;  %s401_s2 = inlined_call_operand.vmem [shape: f32[16,128], index: 2, kind: output, shape index: {}]  }
   0x1   :  { %v13_v0 = vld [vmem:[%s399_s1] sm:$0xff]  ;;  %v14_v1 = vld [vmem:[%s399_s1 + $0x8] sm:$0xff]  ;;  %vm307_vm1 = vmpackc.low %vm29_vm0, %vm29_vm0 }
   0x2   :  { %v236_v3 = vpack.c.bf16 %v14_v1, %v13_v0  ;;  %v15_v4 = vld [vmem:[%s399_s1 + $0x10] sm:$0xff]  ;;  %v16_v5 = vld [vmem:[%s399_s1 + $0x18] sm:$0xff]  ;;  %v11_v7 = vld [vmem:[%s400_s0] sm:$0xff] }
   0x3   :  { %v242_v6 = vpack.c.bf16 %v16_v5, %v15_v4  ;;  %v17_v8 = vld [vmem:[%s399_s1 + $0x20] sm:$0xff]  ;;  %v18_v9 = vld [vmem:[%s399_s1 + $0x28] sm:$0xff]  ;;  %233 = vmatprep.mubr.msk.f32.mxu0 %vm29_vm0, %v11_v7  ;;  %v19_v11 = vld [vmem:[%s399_s1 + $0x30] sm:$0xff] }
   0x4   :  { %238 = vmatprep.subr.msk.bf16.mxu0 %vm307_vm1, %v236_v3  ;;  %v248_v10 = vpack.c.bf16 %v18_v9, %v17_v8  ;;  %v20_v12 = vld [vmem:[%s399_s1 + $0x38] sm:$0xff]  ;;  %v21_v14 = vld [vmem:[%s399_s1 + $0x40] sm:$0xff]  ;;  %v22_v15 = vld [vmem:[%s399_s1 + $0x48] sm:$0xff] }
   0x5   :  { %241 = vmatpush3.bf16.xpose.msk.msra.mxu0 %vm307_vm1, %v236_v3  ;;  %v254_v13 = vpack.c.bf16 %v20_v12, %v19_v11  ;;  %v260_v16 = vpack.c.bf16 %v22_v15, %v21_v14  ;;  %v23_v17 = vld [vmem:[%s399_s1 + $0x50] sm:$0xff]  ;;  %v24_v18 = vld [vmem:[%s399_s1 + $0x58] sm:$0xff]  ;;  %v25_v20 = vld [vmem:[%s399_s1 + $0x60] sm:$0xff] }
   0x6   :  { %244 = vmatprep.subr.msk.bf16.mxu0 %vm307_vm1, %v242_v6  ;;  %v266_v19 = vpack.c.bf16 %v24_v18, %v23_v17  ;;  %v26_v21 = vld [vmem:[%s399_s1 + $0x68] sm:$0xff]  ;;  %v27_v23 = vld [vmem:[%s399_s1 + $0x70] sm:$0xff]  ;;  %v28_v24 = vld [vmem:[%s399_s1 + $0x78] sm:$0xff] }
   0x7   :  { %v272_v22 = vpack.c.bf16 %v26_v21, %v25_v20  ;;  %v278_v25 = vpack.c.bf16 %v28_v24, %v27_v23  ;;  %v12_v26 = vld [vmem:[%s400_s0 + $0x8] sm:$0xff] }
   0xd   :  { %247 = vmatpush3.bf16.xpose.msk.msra.mxu0 %vm307_vm1, %v242_v6 }
   0xe   :  { %250 = vmatprep.subr.msk.bf16.mxu0 %vm307_vm1, %v248_v10 }
  0x15   :  { %253 = vmatpush3.bf16.xpose.msk.msra.mxu0 %vm307_vm1, %v248_v10 }
  0x16   :  { %256 = vmatprep.subr.msk.bf16.mxu0 %vm307_vm1, %v254_v13 }
  0x1d   :  { %259 = vmatpush3.bf16.xpose.msk.msra.mxu0 %vm307_vm1, %v254_v13 }
  0x1e   :  { %262 = vmatprep.subr.msk.bf16.mxu0 %vm307_vm1, %v260_v16 }
  0x25   :  { %265 = vmatpush3.bf16.xpose.msk.msra.mxu0 %vm307_vm1, %v260_v16 }
  0x26   :  { %268 = vmatprep.subr.msk.bf16.mxu0 %vm307_vm1, %v266_v19 }
  0x2d   :  { %271 = vmatpush3.bf16.xpose.msk.msra.mxu0 %vm307_vm1, %v266_v19 }
  0x2e   :  { %274 = vmatprep.subr.msk.bf16.mxu0 %vm307_vm1, %v272_v22 }
  0x35   :  { %277 = vmatpush3.bf16.xpose.msk.msra.mxu0 %vm307_vm1, %v272_v22 }
  0x36   :  { %280 = vmatprep.subr.msk.bf16.mxu0 %vm307_vm1, %v278_v25 }
  0x3d   :  { %283 = vmatpush3.bf16.xpose.msk.msra.mxu0 %vm307_vm1, %v278_v25 }
  0x44   :  { %234 = vmatmul.mubr.msk.f32.vlgmr.msra.gmra.mrb[0].mxu0 %vm29_vm0, %v12_v26 }
 0x117   :  { %v235_v27 = vpop.f32.mrb[0].mxu0 }
 0x118   :  { %160 = vst [vmem:[%s401_s2 + $0x8] sm:$0xff] %v235_v27  ;;  %v150_v28 = vpop.f32.mrb[1].mxu0 }
 0x119   :  { %159 = vst [vmem:[%s401_s2] sm:$0xff] %v150_v28 }

// kernel: mp_self_attention.4
= control target key start
LH: loop header
LB: loop body
LE: loop exit
PB: predicated region body
PF: predicated region fallthrough
CT: control target
= control target key end

     0   :  { %s1602_s15 = smov 0   ;;  %s1604_s16 = smov 0   ;;  %s1829_s0 = inlined_call_operand.vmem [shape: f32[2,8,32], index: 0, kind: input, shape index: {}]   ;;  %s1830_s1 = inlined_call_operand.vmem [shape: f32[2,8,32], index: 1, kind: input, shape index: {}]   ;;  %s1831_s2 = inlined_call_operand.vmem [shape: f32[2,8,32], index: 2, kind: input, shape index: {}]   ;;  %s1832_s3 = inlined_call_operand.vmem [shape: f32[1,32], index: 3, kind: input, shape index: {}]   ;;  %s1833_s4 = inlined_call_operand.vmem [shape: f32[2,8,32], index: 4, kind: output, shape index: {}]  }
   0x1   :  { %s1606_s17 = smov 0  }
   0x2 LB: > { %s33_s18 = sadd.s32 1, %s1561_s16  ;;  %p1391_p0 = scmp.ge.s32.totalorder %s1565_s17, 1  ;;  %s1565_s17 = sphi %s1606_s17, %s14_s17   ;;  %s1561_s16 = sphi %s1604_s16, %s1835_s16   ;;  %s1557_s15 = sphi %s1602_s15, %s1834_s15  }
   0x3   : > { %p35_p1 = scmp.ge.s32.totalorder %s33_s18, 2  ;;  %p231_p2 = scmp.lt.s32.totalorder %s1565_s17, 3 }
   0x5   : > { %s1837_s18 = smov (%p35_p1, %s33_s18), 0  ;;  %p232_p3 = pnand %p1391_p0, %p231_p2 }
   0x6   : > { %p279_p4 = scmp.lt.s32.totalorder (!%p232_p3), %s1557_s15, 1  ;;  %vm330_vm0 = vcmask (!%p232_p3), 64512   ;;  %v1567_v6 = vmov (!%p232_p3), 0.0   ;;  %vm1568_vm1 = vmmov (!%p232_p3), 0   ;;  %s1569_s26 = smov (!%p232_p3), 120   ;;  %vm321_vm2 = vcmask (!%p232_p3), 7168  }
   0x7   : > { %235 = sbr.rel (%p232_p3) target bundleno = 1659 (0x67b), region = 36  ;;  %1427 = vmatprep.subr.mxu0 (!%p232_p3), %v1567_v6  ;;  %331 = vst.msk [vmem:[#allocation4] sm:$0xff] (!%p232_p3), %vm330_vm0, %v1567_v6  ;;  %332 = vst.msk [vmem:[#allocation4 + $0x8] sm:$0xff] (!%p232_p3), %vm330_vm0, %v1567_v6  ;;  %1432 = vmatprep.subr.mxu1 (!%p232_p3), %v1567_v6  ;;  %s1570_s27 = smov (!%p232_p3), 112   ;;  %v1663_v14 = vld [vmem:[%s1832_s3] ss:$0 sm:$0xff] (!%p232_p3)  ;;  %v340_v29 = vlaneseq (!%p232_p3) }
   0x8   : > { %333 = vst.msk [vmem:[#allocation4 + $0x10] sm:$0xff] (!%p232_p3), %vm330_vm0, %v1567_v6  ;;  %334 = vst.msk [vmem:[#allocation4 + $0x18] sm:$0xff] (!%p232_p3), %vm330_vm0, %v1567_v6  ;;  %1429 = vmatprep.mubr.msk.f32.mxu0 (!%p232_p3), %vm1568_vm1, %v1567_v6  ;;  %1434 = vmatprep.mubr.msk.f32.mxu1 (!%p232_p3), %vm1568_vm1, %v1567_v6  ;;  %s1571_s28 = smov (!%p232_p3), 104   ;;  %v1572_v26 = vmov (!%p232_p3), -inf   ;;  %v1573_v41 = vmov (!%p232_p3), 0   ;;  %s1574_s11 = smov (!%p232_p3), 8  }
   0x9   : > { %322 = vst.msk [vmem:[#allocation2] sm:$0xff] (!%p232_p3), %vm321_vm2, %v1572_v26  ;;  %323 = vst.msk [vmem:[#allocation2 + $0x8] sm:$0xff] (!%p232_p3), %vm321_vm2, %v1572_v26  ;;  %v1689_v30 = vshrl.u32 (!%p232_p3), %v340_v29, 7  ;;  %v1691_v31 = vand.u32 (!%p232_p3), 127, %v340_v29  ;;  %1501 = vset.pattern.permute.xlu1 (!%p232_p3), %v1573_v41  ;;  %1502 = vset.pattern.permute.xlu0 (!%p232_p3), %v1573_v41  ;;  %s1575_s12 = smov (!%p232_p3), 16   ;;  %s1576_s13 = smov (!%p232_p3), 24  }
   0xa   : > { %324 = vst.msk [vmem:[#allocation2 + $0x10] sm:$0xff] (!%p232_p3), %vm321_vm2, %v1572_v26  ;;  %325 = vst.msk [vmem:[#allocation2 + $0x18] sm:$0xff] (!%p232_p3), %vm321_vm2, %v1572_v26  ;;  %vm1244_vm4 = vcmask (!%p232_p3), 130112   ;;  %vm1261_vm5 = vcmask (!%p232_p3), 195712   ;;  %vm1278_vm6 = vcmask (!%p232_p3), 261312  }
   0xb   : > { %326 = vst.msk [vmem:[#allocation3] sm:$0xff] (!%p232_p3), %vm321_vm2, %v1567_v6  ;;  %327 = vst.msk [vmem:[#allocation3 + $0x8] sm:$0xff] (!%p232_p3), %vm321_vm2, %v1567_v6  ;;  %vm348_vm3 = vcmp.le.s32.totalorder (!%p232_p3), %v1691_v31, %v1689_v30 }
   0xc   : > { %328 = vst.msk [vmem:[#allocation3 + $0x10] sm:$0xff] (!%p232_p3), %vm321_vm2, %v1567_v6  ;;  %329 = vst.msk [vmem:[#allocation3 + $0x18] sm:$0xff] (!%p232_p3), %vm321_vm2, %v1567_v6 }
   0xe   : > { %s1839_s15 = smov (!%p279_p4, %s1557_s15), 1 }
   0xf   : > { %s1620_s19 = sshll.u32 %s1839_s15, 3 }
  0x10   : > { %s294_s22 = scalar_lea.vmem %s1830_s1, %s1620_s19  ;;  %s285_s25 = scalar_lea.vmem %s1829_s0, %s1620_s19  ;;  %v1714_v60 = vld [vmem:[#allocation2] sm:$0xff] }
  0x11   : > { %v1630_v0 = vld [vmem:[%s294_s22] sm:$0xff]  ;;  %s305_s7 = scalar_lea.vmem %s1831_s2, %s1620_s19  ;;  %s1809_s10 = scalar_lea.vmem %s1833_s4, %s1620_s19 }
  0x12   : > { %v1632_v1 = vld [vmem:[%s285_s25] sm:$0xff]  ;;  %v370_v2 = vmul.f32 %v1630_v0, %v1630_v0 }
  0x13   : > { %v353_v3 = vmul.f32 %v1632_v1, %v1632_v1 }
  0x14   : > { %v371_v4 = vsel %vm330_vm0, %v370_v2, 0.0  ;;  %577 = vrot.lane.b32.xlu1 %v370_v2, %s1569_s26 }
  0x15   : > { %372 = vadd.xlane.f32.xlu0 %v371_v4  ;;  %v355_v5 = vsel %vm330_vm0, %v353_v3, 0.0 }
  0x18   : > { %565 = vrot.lane.b32.xlu1 %v353_v3, %s1569_s26 }
  0x19   : > { %356 = vadd.xlane.f32.xlu0 %v355_v5 }
  0x1c   : > { %783 = vrot.lane.b32.xlu1 %v353_v3, %s1570_s27 }
  0x20   : > { %1010 = vrot.lane.b32.xlu1 %v370_v2, %s1571_s28 }
  0x24   : > { %999 = vrot.lane.b32.xlu1 %v353_v3, %s1571_s28 }
  0x2f   : > { %794 = vrot.lane.b32.xlu0 %v370_v2, %s1570_s27 }
  0x86   : > { %v578_v20 = vpop.permute.xlu1 %577 }
  0x87   : > { %v580_v21 = vsel %vm330_vm0, %v578_v20, 0.0 }
  0x88   : > { %581 = vadd.xlane.f32.xlu0 %v580_v21 }
  0x8a   : > { %v566_v22 = vpop.permute.xlu1 %565 }
  0x8b   : > { %v568_v37 = vsel %vm330_vm0, %v566_v22, 0.0 }
  0x8e   : > { %v784_v23 = vpop.permute.xlu1 %783 }
  0x8f   : > { %v786_v24 = vsel %vm330_vm0, %v784_v23, 0.0 }
  0x90   : > { %787 = vadd.xlane.f32.xlu0 %v786_v24 }
  0x92   : > { %v1011_v25 = vpop.permute.xlu1 %1010 }
  0x93   : > { %v1013_v40 = vsel %vm330_vm0, %v1011_v25, 0.0 }
  0x96   : > { %v1000_v27 = vpop.permute.xlu1 %999 }
  0x97   : > { %v1002_v28 = vsel %vm330_vm0, %v1000_v27, 0.0 }
  0x98   : > { %1003 = vadd.xlane.f32.xlu0 %v1002_v28 }
  0xa2   : > { %v373_v7 = vpop.xlane.xlu0 %372 }
  0xa3   : > { %v374_v8 = vmul.f32 0.125, %v373_v7  ;;  %v1728_v7 = vld [vmem:[%s305_s7] sm:$0xff] }
  0xa4   : > { %1433 = vmatpush3.msra.mxu1 %v1728_v7 }
  0xa5   : > { %v375_v9 = vadd.f32 1e-06, %v374_v8  ;;  %1437 = vmatprep.subr.mxu1 %v1567_v6 }
  0xa6   : > { %v357_v10 = vpop.xlane.xlu0 %356 }
  0xa7   : > { %1503 = vrsqrt.f32 %v375_v9  ;;  %v359_v11 = vmul.f32 0.125, %v357_v10 }
  0xa9   : > { %v360_v12 = vadd.f32 1e-06, %v359_v11 }
  0xaa   : > { %v795_v38 = vpop.permute.xlu0 %794 }
  0xab   : > { %1505 = vrsqrt.f32 %v360_v12  ;;  %v797_v39 = vsel %vm330_vm0, %v795_v38, 0.0 }
  0xb1   : > { %v1504_v13 = vpop.eup %1503 }
  0xb2   : > { %v377_v15 = vmul.f32 %v1504_v13, %v1630_v0 }
  0xb4   : > { %v378_v16 = vmul.f32 %v1663_v14, %v377_v15 }
  0xb5   : > { %v1506_v17 = vpop.eup %1505 }
  0xb6   : > { %1428 = vmatpush3.xpose.msk.msra.mxu0 %vm330_vm0, %v378_v16  ;;  %v362_v18 = vmul.f32 %v1506_v17, %v1632_v1 }
  0xb7   : > { %1442 = vmatprep.subr.mxu0 %v1567_v6 }
  0xb8   : > { %v369_v19 = vmul.f32 %v1663_v14, %v362_v18 }
  0xba   : > { %1430 = vmatmul.mubr.msk.f32.vlgmr.msra.gmra.mrb[0].mxu0 %vm330_vm0, %v369_v19 }
  0xbb   : > { %1444 = vmatprep.mubr.msk.f32.mxu0 %vm1568_vm1, %v1567_v6 }
 0x115   : > { %v582_v42 = vpop.xlane.xlu0 %581 }
 0x116   : > { %v583_v43 = vmul.f32 0.125, %v582_v42 }
 0x118   : > { %v584_v44 = vadd.f32 1e-06, %v583_v43 }
 0x11a   : > { %1507 = vrsqrt.f32 %v584_v44 }
 0x11d   : > { %v788_v45 = vpop.xlane.xlu0 %787 }
 0x11e   : > { %v789_v46 = vmul.f32 0.125, %v788_v45 }
 0x120   : > { %v790_v47 = vadd.f32 1e-06, %v789_v46 }
 0x122   : > { %1509 = vrsqrt.f32 %v790_v47 }
 0x124   : > { %v1508_v51 = vpop.eup %1507 }
 0x125   : > { %v1004_v48 = vpop.xlane.xlu0 %1003  ;;  %v586_v52 = vmul.f32 %v1508_v51, %v1630_v0  ;;  %v671_v51 = vld [vmem:[#allocation2 + $0x8] sm:$0xff] }
 0x126   : > { %v1005_v49 = vmul.f32 0.125, %v1004_v48 }
 0x127   : > { %v587_v53 = vmul.f32 %v1663_v14, %v586_v52  ;;  %v473_v52 = vld [vmem:[#allocation3] sm:$0xff] }
 0x128   : > { %v1006_v50 = vadd.f32 1e-06, %v1005_v49 }
 0x129   : > { %592 = vrot.lane.b32.xlu0 %v587_v53, %s1569_s26 }
 0x12a   : > { %1511 = vrsqrt.f32 %v1006_v50 }
 0x12c   : > { %v1510_v54 = vpop.eup %1509 }
 0x12d   : > { %v792_v55 = vmul.f32 %v1510_v54, %v1632_v1  ;;  %v888_v54 = vld [vmem:[#allocation2 + $0x10] sm:$0xff] }
 0x12f   : > { %v793_v56 = vmul.f32 %v1663_v14, %v792_v55 }
 0x131   : > { %806 = vrot.lane.b32.xlu0 %v793_v56, %s1570_s27 }
 0x134   : > { %v1512_v57 = vpop.eup %1511 }
 0x135   : > { %v1008_v58 = vmul.f32 %v1512_v57, %v1632_v1 }
 0x137   : > { %v1009_v59 = vmul.f32 %v1663_v14, %v1008_v58 }
 0x139   : > { %1022 = vrot.lane.b32.xlu0 %v1009_v59, %s1571_s28 }
 0x18d   : > { %v451_v32 = vpop.f32.mrb[0].mxu0 }
 0x18e   : > { %v455_v33 = vmul.f32 0.35355338, %v451_v32  ;;  %v1431_v34 = vpop.f32.mrb[1].mxu0 }
 0x190   : > { %v1698_v35 = vsel %vm348_vm3, %v455_v33, -inf }
 0x191   : > { %v458_v36 = vsel %vm330_vm0, %v1698_v35, -inf }
 0x192   : > { %459 = vmax.xlane.f32.xlu1 %v458_v36 }
 0x196   : > { %569 = vadd.xlane.f32.xlu1 %v568_v37 }
 0x19a   : > { %798 = vadd.xlane.f32.xlu1 %v797_v39 }
 0x19b   : > { %v593_v26 = vpop.permute.xlu0 %592 }
 0x19e   : > { %1014 = vadd.xlane.f32.xlu1 %v1013_v40 }
 0x21f   : > { %v460_v61 = vpop.xlane.xlu1 %459 }
 0x220   : > { %v1717_v62 = vmax.f32 %v1714_v60, %v460_v61 }
 0x222   : > { %v462_v63 = vsub.f32 %v1714_v60, %v1717_v62  ;;  %563 = vst.msk [vmem:[#allocation2] sm:$0xff] %vm321_vm2, %v1717_v62  ;;  %467 = vperm.xlu1 %1501, %v1717_v62   ;;  %v1104_v60 = vld [vmem:[#allocation2 + $0x18] sm:$0xff] }
 0x223   : > { %v570_v2 = vpop.xlane.xlu1 %569 }
 0x224   : > { %v571_v3 = vmul.f32 0.125, %v570_v2  ;;  %v463_v50 = vmul.f32 1.442695, %v462_v63 }
 0x226   : > { %v572_v4 = vadd.f32 1e-06, %v571_v3 }
 0x227   : > { %v799_v5 = vpop.xlane.xlu1 %798 }
 0x228   : > { %1513 = vrsqrt.f32 %v572_v4  ;;  %v800_v8 = vmul.f32 0.125, %v799_v5 }
 0x22a   : > { %v801_v9 = vadd.f32 1e-06, %v800_v8 }
 0x22b   : > { %v1015_v10 = vpop.xlane.xlu1 %1014 }
 0x22c   : > { %1515 = vrsqrt.f32 %v801_v9  ;;  %v1016_v11 = vmul.f32 0.125, %v1015_v10 }
 0x22e   : > { %v1017_v12 = vadd.f32 1e-06, %v1016_v11 }
 0x230   : > { %1517 = vrsqrt.f32 %v1017_v12 }
 0x232   : > { %v1514_v13 = vpop.eup %1513 }
 0x233   : > { %v574_v15 = vmul.f32 %v1514_v13, %v1632_v1 }
 0x235   : > { %v575_v16 = vmul.f32 %v1663_v14, %v574_v15 }
 0x236   : > { %v1516_v17 = vpop.eup %1515 }
 0x237   : > { %589 = vrot.lane.b32.xlu1 %v575_v16, %s1569_s26  ;;  %v803_v18 = vmul.f32 %v1516_v17, %v1630_v0 }
 0x239   : > { %v804_v19 = vmul.f32 %v1663_v14, %v803_v18 }
 0x23a   : > { %v1518_v20 = vpop.eup %1517 }
 0x23b   : > { %809 = vrot.lane.b32.xlu1 %v804_v19, %s1570_s27  ;;  %v1019_v21 = vmul.f32 %v1518_v20, %v1630_v0  ;;  %v807_v0 = vpop.permute.xlu0 %806 }
 0x23d   : > { %v1020_v22 = vmul.f32 %v1663_v14, %v1019_v21 }
 0x23f   : > { %1025 = vrot.lane.b32.xlu1 %v1020_v22, %s1571_s28  ;;  %v1023_v29 = vpop.permute.xlu0 %1022 }
 0x2a1   : > { %v468_v23 = vpop.permute.xlu1 %467 }
 0x2a2   : > { %v470_v1 = vsub.f32 %v1698_v35, %v468_v23 }
 0x2a4   : > { %v471_v24 = vmul.f32 1.442695, %v470_v1 }
 0x2a6   : > { %1519 = vpow2.f32 %v471_v24 }
 0x2a7   : > { %1521 = vpow2.f32 %v463_v50 }
 0x2a9   : > { %v590_v25 = vpop.permute.xlu1 %589 }
 0x2ad   : > { %v810_v28 = vpop.permute.xlu1 %809 }
 0x2b0   : > { %v1520_v27 = vpop.eup %1519 }
 0x2b1   : > { %1435 = vmatmul.mubr.msk.f32.vlgmr.msra.gmra.mrb[0].mxu1 %vm330_vm0, %v1520_v27  ;;  %v1026_v14 = vpop.permute.xlu1 %1025  ;;  %v475_v44 = vsel %vm330_vm0, %v1520_v27, 0.0  ;;  %v1781_v30 = vpop.eup %1521 }
 0x2b2   : > { %1438 = vmatpush3.xpose.msk.msra.mxu1 %vm330_vm0, %v593_v26  ;;  %1439 = vmatprep.mubr.msk.f32.mxu1 %vm1568_vm1, %v1567_v6  ;;  %v474_v56 = vmul.f32 %v1781_v30, %v473_v52 }
 0x2b3   : > { %1447 = vmatprep.subr.mxu1 %v1567_v6 }
 0x2b5   : > { %1440 = vmatmul.mubr.msk.f32.vlgmr.msra.gmra.mrb[2].mxu1 %vm330_vm0, %v590_v25 }
 0x2b6   : > { %1448 = vmatpush3.xpose.msk.msra.mxu1 %vm330_vm0, %v810_v28  ;;  %1449 = vmatprep.mubr.msk.f32.mxu1 %vm1568_vm1, %v1567_v6 }
 0x2b7   : > { %1457 = vmatprep.subr.mxu1 %v1567_v6 }
 0x2b9   : > { %1450 = vmatmul.mubr.msk.f32.vlgmr.msra.gmra.mrb[4].mxu1 %vm330_vm0, %v807_v0 }
 0x2ba   : > { %1458 = vmatpush3.xpose.msk.msra.mxu1 %vm330_vm0, %v1026_v14  ;;  %1459 = vmatprep.mubr.msk.f32.mxu1 %vm1568_vm1, %v1567_v6  ;;  %v688_v14 = vld [vmem:[#allocation3 + $0x8] sm:$0xff] }
 0x2bd   : > { %1460 = vmatmul.mubr.msk.f32.vlgmr.msra.gmra.mrb[6].mxu1 %vm330_vm0, %v1023_v29 }
 0x384   : > { %v1757_v32 = vpop.f32.mrb[0].mxu1 }
 0x385   : > { %v1436_v33 = vpop.f32.mrb[1].mxu1 }
 0x388   : > { %v664_v34 = vpop.f32.mrb[2].mxu1 }
 0x389   : > { %v668_v35 = vmul.f32 0.35355338, %v664_v34  ;;  %v1441_v36 = vpop.f32.mrb[3].mxu1  ;;  %v905_v34 = vld [vmem:[#allocation3 + $0x10] sm:$0xff] }
 0x38b   : > { %v669_v37 = vsel %vm348_vm3, %v668_v35, -inf }
 0x38c   : > { %v881_v38 = vpop.f32.mrb[4].mxu1  ;;  %v672_v39 = vsel %vm330_vm0, %v669_v37, -inf }
 0x38d   : > { %v885_v40 = vmul.f32 0.35355338, %v881_v38  ;;  %673 = vmax.xlane.f32.xlu1 %v672_v39  ;;  %v1451_v41 = vpop.f32.mrb[5].mxu1  ;;  %v481_v39 = vld [vmem:[#allocation4] sm:$0xff] }
 0x38f   : > { %v886_v42 = vsel %vm348_vm3, %v885_v40, -inf }
 0x390   : > { %v1097_v43 = vpop.f32.mrb[6].mxu1  ;;  %v889_v45 = vsel %vm330_vm0, %v886_v42, -inf }
 0x391   : > { %v1101_v46 = vmul.f32 0.35355338, %v1097_v43  ;;  %476 = vadd.xlane.f32.xlu1 %v475_v44  ;;  %890 = vmax.xlane.f32.xlu0 %v889_v45  ;;  %v1461_v47 = vpop.f32.mrb[7].mxu1 }
 0x393   : > { %v1102_v48 = vsel %vm348_vm3, %v1101_v46, -inf }
 0x394   : > { %v1105_v49 = vsel %vm330_vm0, %v1102_v48, -inf }
 0x395   : > { %1106 = vmax.xlane.f32.xlu0 %v1105_v49 }
 0x3ab   : > { %704 = vrot.lane.b32.xlu0 %v1728_v7, %s1569_s26 }
 0x3af   : > { %920 = vrot.lane.b32.xlu0 %v1728_v7, %s1570_s27 }
 0x3b3   : > { %1136 = vrot.lane.b32.xlu0 %v1728_v7, %s1571_s28 }
 0x41a   : > { %v674_v31 = vpop.xlane.xlu1 %673 }
 0x41b   : > { %v675_v53 = vmax.f32 %v671_v51, %v674_v31 }
 0x41d   : > { %v676_v55 = vsub.f32 %v671_v51, %v675_v53  ;;  %782 = vst.msk [vmem:[#allocation2 + $0x8] sm:$0xff] %vm321_vm2, %v675_v53  ;;  %681 = vperm.xlu1 %1501, %v675_v53  }
 0x41e   : > { %v477_v57 = vpop.xlane.xlu1 %476  ;;  %v891_v58 = vpop.xlane.xlu0 %890 }
 0x41f   : > { %v478_v59 = vadd.f32 %v477_v57, %v474_v56  ;;  %v892_v61 = vmax.f32 %v888_v54, %v891_v58  ;;  %v677_v1 = vmul.f32 1.442695, %v676_v55  ;;  %v696_v55 = vld [vmem:[#allocation4 + $0x8] sm:$0xff]  ;;  %v913_v57 = vld [vmem:[#allocation4 + $0x10] sm:$0xff] }
 0x421   : > { %480 = vst.msk [vmem:[#allocation3] sm:$0xff] %vm321_vm2, %v478_v59  ;;  %v893_v62 = vsub.f32 %v888_v54, %v892_v61  ;;  %998 = vst.msk [vmem:[#allocation2 + $0x10] sm:$0xff] %vm321_vm2, %v892_v61  ;;  %898 = vperm.xlu1 %1501, %v892_v61  }
 0x422   : > { %v1107_v63 = vpop.xlane.xlu0 %1106 }
 0x423   : > { %v1108_v2 = vmax.f32 %v1104_v60, %v1107_v63  ;;  %v894_v21 = vmul.f32 1.442695, %v893_v62  ;;  %v1129_v62 = vld [vmem:[#allocation4 + $0x18] sm:$0xff] }
 0x425   : > { %v1109_v3 = vsub.f32 %v1104_v60, %v1108_v2  ;;  %1214 = vst.msk [vmem:[#allocation2 + $0x18] sm:$0xff] %vm321_vm2, %v1108_v2  ;;  %1114 = vperm.xlu1 %1501, %v1108_v2  }
 0x426   : > { %v705_v4 = vpop.permute.xlu0 %704 }
 0x427   : > { %1443 = vmatpush3.msra.mxu0 %v705_v4  ;;  %v1110_v25 = vmul.f32 1.442695, %v1109_v3 }
 0x428   : > { %1452 = vmatprep.subr.mxu0 %v1567_v6  ;;  %v1218_v26 = vld [vmem:[#allocation3] sm:$0xff] }
 0x42a   : > { %v921_v16 = vpop.permute.xlu0 %920 }
 0x42e   : > { %v1137_v19 = vpop.permute.xlu0 %1136 }
 0x49c   : > { %v682_v5 = vpop.permute.xlu1 %681 }
 0x49d   : > { %v684_v7 = vsub.f32 %v669_v37, %v682_v5 }
 0x49f   : > { %v685_v8 = vmul.f32 1.442695, %v684_v7 }
 0x4a0   : > { %v899_v9 = vpop.permute.xlu1 %898 }
 0x4a1   : > { %1523 = vpow2.f32 %v685_v8  ;;  %v901_v10 = vsub.f32 %v886_v42, %v899_v9 }
 0x4a3   : > { %v902_v11 = vmul.f32 1.442695, %v901_v10 }
 0x4a4   : > { %v1115_v12 = vpop.permute.xlu1 %1114 }
 0x4a5   : > { %1525 = vpow2.f32 %v902_v11  ;;  %v1117_v13 = vsub.f32 %v1102_v48, %v1115_v12 }
 0x4a7   : > { %v1118_v15 = vmul.f32 1.442695, %v1117_v13 }
 0x4a9   : > { %1527 = vpow2.f32 %v1118_v15 }
 0x4aa   : > { %1529 = vpow2.f32 %v894_v21 }
 0x4ab   : > { %v1524_v17 = vpop.eup %1523  ;;  %1531 = vpow2.f32 %v677_v1 }
 0x4ac   : > { %1445 = vmatmul.mubr.msk.f32.vlgmr.msra.gmra.mrb[2].mxu0 %vm330_vm0, %v1524_v17  ;;  %v690_v18 = vsel %vm330_vm0, %v1524_v17, 0.0  ;;  %1533 = vpow2.f32 %v1110_v25 }
 0x4ad   : > { %691 = vadd.xlane.f32.xlu1 %v690_v18  ;;  %1453 = vmatpush3.msra.mxu0 %v921_v16  ;;  %1535 = vrcp.f32 %v1218_v26 }
 0x4ae   : > { %1454 = vmatprep.mubr.msk.f32.mxu0 %vm1568_vm1, %v1567_v6  ;;  %1462 = vmatprep.subr.mxu0 %v1567_v6 }
 0x4af   : > { %v1526_v20 = vpop.eup %1525 }
 0x4b0   : > { %1455 = vmatmul.mubr.msk.f32.vlgmr.msra.gmra.mrb[4].mxu0 %vm330_vm0, %v1526_v20  ;;  %v907_v22 = vsel %vm330_vm0, %v1526_v20, 0.0 }
 0x4b1   : > { %908 = vadd.xlane.f32.xlu0 %v907_v22  ;;  %1463 = vmatpush3.msra.mxu0 %v1137_v19 }
 0x4b2   : > { %1464 = vmatprep.mubr.msk.f32.mxu0 %vm1568_vm1, %v1567_v6 }
 0x4b3   : > { %v1528_v23 = vpop.eup %1527 }
 0x4b4   : > { %1465 = vmatmul.mubr.msk.f32.vlgmr.msra.gmra.mrb[6].mxu0 %vm330_vm0, %v1528_v23  ;;  %v1530_v24 = vpop.eup %1529  ;;  %v1123_v6 = vsel %vm330_vm0, %v1528_v23, 0.0 }
 0x4b5   : > { %v1532_v27 = vpop.eup %1531  ;;  %v906_v36 = vmul.f32 %v1530_v24, %v905_v34 }
 0x4b6   : > { %v1534_v28 = vpop.eup %1533  ;;  %v689_v29 = vmul.f32 %v1532_v27, %v688_v14 }
 0x4b7   : > { %v1536_v0 = vpop.eup %1535 }
 0x4be   : > { %916 = vperm.xlu1 %1501, %v1530_v24  }
 0x4c7   : > { %484 = vperm.xlu0 %1502, %v1781_v30   ;;  %v1121_v30 = vld [vmem:[#allocation3 + $0x18] sm:$0xff] }
 0x4c8   : > { %v1122_v31 = vmul.f32 %v1534_v28, %v1121_v30 }
 0x4cb   : > { %699 = vperm.xlu0 %1502, %v1532_v27  }
 0x4cf   : > { %1132 = vperm.xlu0 %1502, %v1534_v28  }
 0x4d3   : > { %1223 = vperm.xlu0 %1502, %v1536_v0  }
 0x4e2   : > { %1124 = vadd.xlane.f32.xlu1 %v1123_v6 }
 0x53a   : > { %v692_v33 = vpop.xlane.xlu1 %691 }
 0x53b   : > { %v693_v35 = vadd.f32 %v692_v33, %v689_v29 }
 0x53d   : > { %694 = vst.msk [vmem:[#allocation3 + $0x8] sm:$0xff] %vm321_vm2, %v693_v35 }
 0x53e   : > { %v909_v37 = vpop.xlane.xlu0 %908 }
 0x53f   : > { %v910_v38 = vadd.f32 %v909_v37, %v906_v36 }
 0x541   : > { %911 = vst.msk [vmem:[#allocation3 + $0x10] sm:$0xff] %vm321_vm2, %v910_v38 }
 0x544   : > { %v1230_v40 = vld [vmem:[#allocation3 + $0x8] sm:$0xff] }
 0x545   : > { %1537 = vrcp.f32 %v1230_v40 }
 0x546   : > { %v485_v41 = vpop.permute.xlu0 %484 }
 0x547   : > { %v487_v42 = vmul.f32 %v485_v41, %v481_v39 }
 0x548   : > { %v1247_v43 = vld [vmem:[#allocation3 + $0x10] sm:$0xff] }
 0x549   : > { %v561_v44 = vadd.f32 %v1757_v32, %v487_v42  ;;  %1539 = vrcp.f32 %v1247_v43  ;;  %v917_v32 = vpop.permute.xlu1 %916 }
 0x54a   : > { %v700_v45 = vpop.permute.xlu0 %699  ;;  %v919_v60 = vmul.f32 %v917_v32, %v913_v57 }
 0x54b   : > { %562 = vst.msk [vmem:[#allocation4] sm:$0xff] %vm330_vm0, %v561_v44  ;;  %v702_v56 = vmul.f32 %v700_v45, %v696_v55 }
 0x54e   : > { %v1133_v46 = vpop.permute.xlu0 %1132 }
 0x54f   : > { %v1538_v47 = vpop.eup %1537  ;;  %v1135_v5 = vmul.f32 %v1133_v46, %v1129_v62 }
 0x550   : > { %1236 = vperm.xlu0 %1502, %v1538_v47  }
 0x552   : > { %v1220_v48 = vld [vmem:[#allocation4] sm:$0xff]  ;;  %v1224_v49 = vpop.permute.xlu0 %1223 }
 0x553   : > { %v1540_v50 = vpop.eup %1539  ;;  %v1226_v51 = vmul.f32 %v1224_v49, %v1220_v48 }
 0x554   : > { %1253 = vperm.xlu0 %1502, %v1540_v50  }
 0x555   : > { %1228 = vst.msk [vmem:[%s1809_s10] sm:$0xff] %vm330_vm0, %v1226_v51 }
 0x56f   : > { %v1125_v52 = vpop.xlane.xlu1 %1124 }
 0x570   : > { %v1126_v53 = vadd.f32 %v1125_v52, %v1122_v31 }
 0x572   : > { %1127 = vst.msk [vmem:[#allocation3 + $0x18] sm:$0xff] %vm321_vm2, %v1126_v53 }
 0x579   : > { %v1264_v54 = vld [vmem:[#allocation3 + $0x18] sm:$0xff] }
 0x57a   : > { %1541 = vrcp.f32 %v1264_v54 }
 0x57f   : > { %v776_v58 = vpop.f32.mrb[2].mxu0 }
 0x580   : > { %v780_v59 = vadd.f32 %v776_v58, %v702_v56  ;;  %v1446_v61 = vpop.f32.mrb[3].mxu0 }
 0x582   : > { %781 = vst.msk [vmem:[#allocation4 + $0x8] sm:$0xff] %vm330_vm0, %v780_v59 }
 0x583   : > { %v992_v63 = vpop.f32.mrb[4].mxu0 }
 0x584   : > { %v1542_v2 = vpop.eup %1541  ;;  %v996_v3 = vadd.f32 %v992_v63, %v919_v60  ;;  %v1456_v4 = vpop.f32.mrb[5].mxu0 }
 0x585   : > { %1270 = vperm.xlu0 %1502, %v1542_v2  }
 0x586   : > { %997 = vst.msk [vmem:[#allocation4 + $0x10] sm:$0xff] %vm330_vm0, %v996_v3 }
 0x587   : > { %v1208_v7 = vpop.f32.mrb[6].mxu0 }
 0x588   : > { %v1212_v8 = vadd.f32 %v1208_v7, %v1135_v5  ;;  %v1466_v9 = vpop.f32.mrb[7].mxu0 }
 0x589   : > { %v1233_v10 = vld [vmem:[#allocation4 + $0x8] sm:$0xff] }
 0x58a   : > { %1213 = vst.msk [vmem:[#allocation4 + $0x18] sm:$0xff] %vm330_vm0, %v1212_v8 }
 0x58d   : > { %v1250_v13 = vld [vmem:[#allocation4 + $0x10] sm:$0xff] }
 0x591   : > { %v1267_v17 = vld [vmem:[#allocation4 + $0x18] sm:$0xff] }
 0x5cf   : > { %v1237_v11 = vpop.permute.xlu0 %1236 }
 0x5d0   : > { %v1239_v12 = vmul.f32 %v1237_v11, %v1233_v10 }
 0x5d2   : > { %1241 = vrot.lane.b32.xlu1 %v1239_v12, %s1574_s11 }
 0x5d3   : > { %v1254_v15 = vpop.permute.xlu0 %1253 }
 0x5d4   : > { %v1256_v16 = vmul.f32 %v1254_v15, %v1250_v13 }
 0x5d6   : > { %1258 = vrot.lane.b32.xlu0 %v1256_v16, %s1575_s12 }
 0x604   : > { %v1271_v18 = vpop.permute.xlu0 %1270 }
 0x605   : > { %v1273_v19 = vmul.f32 %v1271_v18, %v1267_v17 }
 0x607   : > { %1275 = vrot.lane.b32.xlu0 %v1273_v19, %s1576_s13 }
 0x644   : > { %v1242_v20 = vpop.permute.xlu1 %1241 }
 0x645   : > { %1245 = vst.msk [vmem:[%s1809_s10] sm:$0xff] %vm1244_vm4, %v1242_v20 }
 0x648   : > { %v1259_v21 = vpop.permute.xlu0 %1258 }
 0x649   : > { %1262 = vst.msk [vmem:[%s1809_s10] sm:$0xff] %vm1261_vm5, %v1259_v21 }
 0x679   : > { %v1276_v22 = vpop.permute.xlu0 %1275 }
 0x67a   : > { %1279 = vst.msk [vmem:[%s1809_s10] sm:$0xff] %vm1278_vm6, %v1276_v22 }
 0x67b PF: > { %s14_s17 = sadd.s32 1, %s1565_s17   ;;  %s1834_s15 = smov %s1561_s16 }
 0x67c   : > { %p11_p5 = scmp.ge.s32.totalorder %s14_s17, 4   ;;  %s1835_s16 = smov %s1837_s18 }
 0x67e   :  { %13 = sbr.rel (!%p11_p5) target bundleno = 2 (0x2), region = 99 }

</bundles_post_ra>
